<compile_context>
chip_gen: v7x
topology: tpu7x:2x2x1
jax: 0.10.0
libtpu: 0.0.40
codegen_flags: <defaults>
</compile_context>

<pallas_src>
import functools

import jax
import jax.numpy as jnp
import numpy as np
from jax.experimental import pallas as pl
from jax.experimental.pallas import tpu as pltpu

EPS = 1e-5


def bottleneck_kernel(x_ref, w1_ref, w2_ref, w3_ref,
                      g1_ref, b1_ref, g2_ref, b2_ref, g3_ref, b3_ref,
                      out_ref, *, h_img, w_img, wd, cout):
    R = x_ref.shape[0]                    # N * H  (packed rows)
    inv_m = 1.0 / float(R * w_img)        # 1 / (N*H*W)

    def channel_allreduce(v, c):
        # Cyclic lane butterfly: log2(W) roll+add steps leave every lane
        # (w*c + ch) holding sum over all w of channel ch — per-channel
        # reduce AND broadcast in one go, full f32, no MXU / selectors.
        shift, n = c, w_img
        while n > 1:
            v = v + pltpu.roll(v, shift=shift, axis=1)
            shift *= 2
            n //= 2
        return v

    def bn(y, g_p, b_p, c, relu):
        # Training-mode BatchNorm (biased variance over N*H*W), one-pass stats.
        # TODO(synk): use a two-pass/Welford reduction if |mean| >> std at scale.
        s = jnp.concatenate([jnp.sum(y, axis=0, keepdims=True),
                             jnp.sum(y * y, axis=0, keepdims=True)], axis=0)
        s = channel_allreduce(s, c) * inv_m            # (2, W*C): [mean; E[y^2]]
        mean, ex2 = s[0:1], s[1:2]
        var = ex2 - mean * mean
        scale = g_p * jax.lax.rsqrt(var + EPS)         # gamma pre-tiled to (1, W*C)
        shift = b_p - mean * scale
        z = y * scale + shift                          # one FMA per element
        return jnp.maximum(z, 0.0) if relu else z

    x_bf = x_ref[...]                                  # (R, W*Cin) bf16

    # ---- conv1: 1x1 conv == one lane-packed matmul (bf16 operands, f32 acc) --
    h1 = jnp.dot(x_bf, w1_ref[...], preferred_element_type=jnp.float32)
    h1 = bn(h1, g1_ref[...], b1_ref[...], wd, True)    # (R, W*Wd) f32

    # ---- conv2: 3x3 SAME. kx taps folded into the block-tridiagonal packed
    #      weight; only the 3 height taps built here via sublane rolls + masks.
    row_h = jax.lax.broadcasted_iota(jnp.int32, (R, 1), 0) % h_img

    def tap(dy):                                       # tap[r=(n,h)] = h1[n, h+dy]
        if dy == 0:
            return h1.astype(jnp.bfloat16)
        rolled = pltpu.roll(h1, shift=(-dy) % R, axis=0)   # rolled[r] = h1[r+dy]
        ok = (row_h < h_img - dy) if dy > 0 else (row_h >= -dy)
        return jnp.where(ok, rolled, 0.0).astype(jnp.bfloat16)

    taps_cat = jnp.concatenate([tap(-1), tap(0), tap(1)], axis=1)  # (R, 3*W*Wd)
    h2 = jnp.dot(taps_cat, w2_ref[...], preferred_element_type=jnp.float32)
    h2 = bn(h2, g2_ref[...], b2_ref[...], wd, True)

    # ---- conv3: 1x1 conv ----------------------------------------------------
    h3 = jnp.dot(h2.astype(jnp.bfloat16), w3_ref[...],
                 preferred_element_type=jnp.float32)   # (R, W*Cout)
    h3 = bn(h3, g3_ref[...], b3_ref[...], cout, False)

    # ---- residual add (downsample=None, Cout == Cin) + final ReLU -----------
    # Lane-dense (R, W*Cout) output: full-width unmasked store.
    out_ref[...] = jnp.maximum(h3 + x_bf.astype(jnp.float32), 0.0)


def _full_spec(shape):
    nd = len(shape)
    return pl.BlockSpec(shape, lambda i, _nd=nd: (0,) * _nd)


def pack_bottleneck_params(w1, g1, b1, w2, g2, b2, w3, g3, b3, w_img):
    """Build kron-packed conv weights and lane-tiled BN params ONCE (hoist out
    of the hot path when weights are fixed across calls)."""
    W = w_img
    eye_w = jnp.eye(W, dtype=jnp.float32)
    w1b = jnp.kron(eye_w, w1).astype(jnp.bfloat16)                 # (W*Cin, W*Wd)
    # Fold kx into off-diagonal blocks: per ky, sum_kx kron(eye(W, k=1-kx), w2[ky,kx]).
    # SAME zero-padding along W falls out of the missing edge blocks.
    w2b = jnp.concatenate([
        sum(jnp.kron(jnp.eye(W, k=1 - kx, dtype=jnp.float32), w2[ky, kx])
            for kx in range(3))
        for ky in range(3)], axis=0).astype(jnp.bfloat16)          # (3*W*Wd, W*Wd)
    w3b = jnp.kron(eye_w, w3).astype(jnp.bfloat16)                 # (W*Wd, W*Cout)
    tile = lambda p: jnp.tile(p.astype(jnp.float32), (1, W))       # (1, C)->(1, W*C)
    return (w1b, w2b, w3b,
            tile(g1), tile(b1), tile(g2), tile(b2), tile(g3), tile(b3))


def resnet_bottleneck(x_nhwc, packed):
    N, H, W, Cin = x_nhwc.shape
    assert W & (W - 1) == 0, "lane butterfly assumes W is a power of two"
    w1b, w2b, w3b, g1p, b1p, g2p, b2p, g3p, b3p = packed
    Wd = w1b.shape[1] // W
    Cout = w3b.shape[1] // W
    R = N * H

    # Lane-packed 2D layout: rows = N*H, lanes = W*C (free row-major relabel,
    # done in the wrapper, NOT inside the kernel). Input DMA'd as bf16.
    x_p = x_nhwc.reshape(R, W * Cin).astype(jnp.bfloat16)

    args = (x_p, w1b, w2b, w3b, g1p, b1p, g2p, b2p, g3p, b3p)
    kernel = functools.partial(bottleneck_kernel,
                               h_img=H, w_img=W, wd=Wd, cout=Cout)
    out_p = pl.pallas_call(
        kernel,
        out_shape=jax.ShapeDtypeStruct((R, W * Cout), jnp.float32),
        grid=(1,),
        in_specs=[_full_spec(a.shape) for a in args],
        out_specs=_full_spec((R, W * Cout)),
        compiler_params=pltpu.CompilerParams(
            dimension_semantics=("arbitrary",)),
    )(*args)
    return out_p.reshape(N, H, W, Cout)


def reference_bottleneck(x, w1, g1, b1, w2, g2, b2, w3, g3, b3):
    def bn(y, g, b):
        mean = y.mean(axis=(0, 1, 2), keepdims=True)
        var = ((y - mean) ** 2).mean(axis=(0, 1, 2), keepdims=True)
        return (y - mean) * jax.lax.rsqrt(var + EPS) * g + b

    h = jnp.einsum('nhwc,cd->nhwd', x, w1)
    h = jax.nn.relu(bn(h, g1, b1))
    h = jax.lax.conv_general_dilated(
        h, w2, window_strides=(1, 1), padding='SAME',
        dimension_numbers=('NHWC', 'HWIO', 'NHWC'))
    h = jax.nn.relu(bn(h, g2, b2))
    h = jnp.einsum('nhwc,cd->nhwd', h, w3)
    h = bn(h, g3, b3)
    return jax.nn.relu(h + x)


if __name__ == "__main__":
    # Module config: ResNetBottleneck(inplanes=32, planes=8) -> width=8, out=32
    N, H, W = 2, 16, 16
    inplanes, planes = 32, 8
    width = planes            # base_width=64, groups=1
    cout = planes * 4         # expansion = 4 -> 32 == inplanes (no downsample)

    key = jax.random.PRNGKey(0)
    ks = jax.random.split(key, 12)

    def bf16_exact(a):
        # Keep test inputs/weights exactly representable in bf16 so the f32
        # reference and the bf16-operand kernel see identical parameters.
        return a.astype(jnp.bfloat16).astype(jnp.float32)

    x = bf16_exact(jax.random.normal(ks[0], (N, H, W, inplanes), jnp.float32))

    # conv weights (torch conv1 weight (width, inplanes, 1, 1) <-> w1 (inplanes, width); w2 is HWIO)
    w1 = bf16_exact(0.1 * jax.random.normal(ks[1], (inplanes, width), jnp.float32))
    w2 = bf16_exact(0.1 * jax.random.normal(ks[2], (3, 3, width, width), jnp.float32))
    w3 = bf16_exact(0.1 * jax.random.normal(ks[3], (width, cout), jnp.float32))

    # BN affine params (gamma, beta), shaped (1, C)
    g1 = (1.0 + 0.1 * jax.random.normal(ks[4], (1, width))).astype(jnp.float32)
    b1 = (0.1 * jax.random.normal(ks[5], (1, width))).astype(jnp.float32)
    g2 = (1.0 + 0.1 * jax.random.normal(ks[6], (1, width))).astype(jnp.float32)
    b2 = (0.1 * jax.random.normal(ks[7], (1, width))).astype(jnp.float32)
    g3 = (1.0 + 0.1 * jax.random.normal(ks[8], (1, cout))).astype(jnp.float32)
    b3 = (0.1 * jax.random.normal(ks[9], (1, cout))).astype(jnp.float32)

    # Pack once (weights fixed across calls); forward is the hot path.
    packed = pack_bottleneck_params(w1, g1, b1, w2, g2, b2, w3, g3, b3, W)
    forward = jax.jit(resnet_bottleneck)

    out = forward(x, packed)
    out = jax.block_until_ready(out)

    ref = reference_bottleneck(x, w1, g1, b1, w2, g2, b2, w3, g3, b3)
    ref = jax.block_until_ready(ref)

    # Tolerance sized for bf16 MXU operands (f32 accumulation, f32 BN stats) in
    # the kernel vs the all-f32 reference, through three BatchNorm layers.
    np.testing.assert_allclose(np.asarray(out), np.asarray(ref),
                               rtol=4e-2, atol=4e-2)
    print("KERNEL_OK")
</pallas_src>

<mosaic_0001>
module attributes {stable_mosaic.version = 11 : i64} {
  func.func @bottleneck_kernel(%arg0: i32, %arg1: memref<32x512xbf16, #tpu.memory_space<vmem>>, %arg2: memref<512x128xbf16, #tpu.memory_space<vmem>>, %arg3: memref<384x128xbf16, #tpu.memory_space<vmem>>, %arg4: memref<128x512xbf16, #tpu.memory_space<vmem>>, %arg5: memref<1x128xf32, #tpu.memory_space<vmem>>, %arg6: memref<1x128xf32, #tpu.memory_space<vmem>>, %arg7: memref<1x128xf32, #tpu.memory_space<vmem>>, %arg8: memref<1x128xf32, #tpu.memory_space<vmem>>, %arg9: memref<1x512xf32, #tpu.memory_space<vmem>>, %arg10: memref<1x512xf32, #tpu.memory_space<vmem>>, %arg11: memref<32x512xf32, #tpu.memory_space<vmem>>) attributes {dimension_semantics = [#tpu.dimension_semantics<arbitrary>], iteration_bounds = array<i64: 1>, scalar_prefetch = 0 : i64, scratch_operands = 0 : i64, tpu.core_type = #tpu.core_type<tc>, window_params = [{pipeline_mode = #tpu.pipeline_mode<synchronous>, transform_indices = @transform_0, window_bounds = array<i64: 32, 512>}, {pipeline_mode = #tpu.pipeline_mode<synchronous>, transform_indices = @transform_1, window_bounds = array<i64: 512, 128>}, {pipeline_mode = #tpu.pipeline_mode<synchronous>, transform_indices = @transform_2, window_bounds = array<i64: 384, 128>}, {pipeline_mode = #tpu.pipeline_mode<synchronous>, transform_indices = @transform_3, window_bounds = array<i64: 128, 512>}, {pipeline_mode = #tpu.pipeline_mode<synchronous>, transform_indices = @transform_4, window_bounds = array<i64: 1, 128>}, {pipeline_mode = #tpu.pipeline_mode<synchronous>, transform_indices = @transform_5, window_bounds = array<i64: 1, 128>}, {pipeline_mode = #tpu.pipeline_mode<synchronous>, transform_indices = @transform_6, window_bounds = array<i64: 1, 128>}, {pipeline_mode = #tpu.pipeline_mode<synchronous>, transform_indices = @transform_7, window_bounds = array<i64: 1, 128>}, {pipeline_mode = #tpu.pipeline_mode<synchronous>, transform_indices = @transform_8, window_bounds = array<i64: 1, 512>}, {pipeline_mode = #tpu.pipeline_mode<synchronous>, transform_indices = @transform_9, window_bounds = array<i64: 1, 512>}, {pipeline_mode = #tpu.pipeline_mode<synchronous>, transform_indices = @transform_10, window_bounds = array<i64: 32, 512>}]} {
    %c0 = arith.constant 0 : index
    %c0_0 = arith.constant 0 : index
    %0 = vector.load %arg1[%c0, %c0_0] : memref<32x512xbf16, #tpu.memory_space<vmem>>, vector<32x512xbf16>
    %c0_1 = arith.constant 0 : index
    %c0_2 = arith.constant 0 : index
    %1 = vector.load %arg2[%c0_1, %c0_2] : memref<512x128xbf16, #tpu.memory_space<vmem>>, vector<512x128xbf16>
    %cst = arith.constant dense<0.000000e+00> : vector<32x128xf32>
    %2 = tpu.matmul %0, %1, %cst {dimension_numbers = #tpu.dot_dimension_numbers<[1], [0], [0], [1], [0, 0, 1, 1], [], []>} : vector<32x512xbf16>, vector<512x128xbf16>, vector<32x128xf32> -> vector<32x128xf32>
    %c0_3 = arith.constant 0 : index
    %c0_4 = arith.constant 0 : index
    %3 = vector.load %arg5[%c0_3, %c0_4] : memref<1x128xf32, #tpu.memory_space<vmem>>, vector<1x128xf32>
    %c0_5 = arith.constant 0 : index
    %c0_6 = arith.constant 0 : index
    %4 = vector.load %arg6[%c0_5, %c0_6] : memref<1x128xf32, #tpu.memory_space<vmem>>, vector<1x128xf32>
    %cst_7 = arith.constant dense<0.000000e+00> : vector<128xf32>
    %5 = vector.multi_reduction <add>, %2, %cst_7 [0] : vector<32x128xf32> to vector<128xf32>
    %6 = vector.shape_cast %5 : vector<128xf32> to vector<1x128xf32>
    %7 = arith.mulf %2, %2 : vector<32x128xf32>
    %cst_8 = arith.constant dense<0.000000e+00> : vector<128xf32>
    %8 = vector.multi_reduction <add>, %7, %cst_8 [0] : vector<32x128xf32> to vector<128xf32>
    %9 = vector.shape_cast %8 : vector<128xf32> to vector<1x128xf32>
    %10 = tpu.concatenate %6, %9 in 0 : vector<1x128xf32>, vector<1x128xf32> -> vector<2x128xf32>
    %c8_i32 = arith.constant 8 : i32
    %11 = tpu.dynamic_rotate %10 by %c8_i32 dim 1 : vector<2x128xf32>, i32 -> vector<2x128xf32>
    %12 = arith.addf %10, %11 : vector<2x128xf32>
    %c16_i32 = arith.constant 16 : i32
    %13 = tpu.dynamic_rotate %12 by %c16_i32 dim 1 : vector<2x128xf32>, i32 -> vector<2x128xf32>
    %14 = arith.addf %12, %13 : vector<2x128xf32>
    %c32_i32 = arith.constant 32 : i32
    %15 = tpu.dynamic_rotate %14 by %c32_i32 dim 1 : vector<2x128xf32>, i32 -> vector<2x128xf32>
    %16 = arith.addf %14, %15 : vector<2x128xf32>
    %c64_i32 = arith.constant 64 : i32
    %17 = tpu.dynamic_rotate %16 by %c64_i32 dim 1 : vector<2x128xf32>, i32 -> vector<2x128xf32>
    %18 = arith.addf %16, %17 : vector<2x128xf32>
    %cst_9 = arith.constant 0.001953125 : f32
    %19 = vector.broadcast %cst_9 : f32 to vector<2x128xf32>
    %20 = arith.mulf %18, %19 : vector<2x128xf32>
    %21 = vector.extract_strided_slice %20 {offsets = [0, 0], sizes = [1, 128], strides = [1, 1]} : vector<2x128xf32> to vector<1x128xf32>
    %22 = vector.extract_strided_slice %20 {offsets = [1, 0], sizes = [1, 128], strides = [1, 1]} : vector<2x128xf32> to vector<1x128xf32>
    %23 = arith.mulf %21, %21 : vector<1x128xf32>
    %24 = arith.subf %22, %23 : vector<1x128xf32>
    %cst_10 = arith.constant 9.99999974E-6 : f32
    %25 = vector.broadcast %cst_10 : f32 to vector<1x128xf32>
    %26 = arith.addf %24, %25 : vector<1x128xf32>
    %27 = math.rsqrt %26 : vector<1x128xf32>
    %28 = arith.mulf %3, %27 : vector<1x128xf32>
    %29 = arith.mulf %21, %28 : vector<1x128xf32>
    %30 = arith.subf %4, %29 : vector<1x128xf32>
    %31 = vector.broadcast %28 : vector<1x128xf32> to vector<32x128xf32>
    %32 = arith.mulf %2, %31 : vector<32x128xf32>
    %33 = vector.broadcast %30 : vector<1x128xf32> to vector<32x128xf32>
    %34 = arith.addf %32, %33 : vector<32x128xf32>
    %cst_11 = arith.constant 0.000000e+00 : f32
    %35 = vector.broadcast %cst_11 : f32 to vector<32x128xf32>
    %36 = arith.maximumf %34, %35 : vector<32x128xf32>
    %37 = tpu.iota {dimensions = array<i32: 0>} : vector<32x1xi32>
    %c16_i32_12 = arith.constant 16 : i32
    %c0_i32 = arith.constant 0 : i32
    %38 = arith.cmpi eq, %c16_i32_12, %c0_i32 : i32
    %c1_i32 = arith.constant 1 : i32
    %39 = arith.select %38, %c1_i32, %c16_i32_12 : i32
    %40 = vector.broadcast %39 : i32 to vector<32x1xi32>
    %41 = arith.remsi %37, %40 : vector<32x1xi32>
    %c0_i32_13 = arith.constant 0 : i32
    %42 = vector.broadcast %c0_i32_13 : i32 to vector<32x1xi32>
    %43 = arith.cmpi ne, %41, %42 : vector<32x1xi32>
    %c0_i32_14 = arith.constant 0 : i32
    %44 = vector.broadcast %c0_i32_14 : i32 to vector<32x1xi32>
    %45 = arith.cmpi slt, %41, %44 : vector<32x1xi32>
    %c0_i32_15 = arith.constant 0 : i32
    %46 = arith.cmpi slt, %39, %c0_i32_15 : i32
    %47 = vector.broadcast %46 : i1 to vector<32x1xi1>
    %48 = vector.broadcast %47 : vector<32x1xi1> to vector<32x1xi1>
    %49 = arith.xori %45, %48 : vector<32x1xi1>
    %50 = arith.andi %49, %43 : vector<32x1xi1>
    %51 = vector.broadcast %39 : i32 to vector<32x1xi32>
    %52 = arith.addi %41, %51 : vector<32x1xi32>
    %53 = arith.select %50, %52, %41 : vector<32x1xi1>, vector<32x1xi32>
    %c1_i32_16 = arith.constant 1 : i32
    %54 = tpu.dynamic_rotate %36 by %c1_i32_16 dim 0 : vector<32x128xf32>, i32 -> vector<32x128xf32>
    %c1_i32_17 = arith.constant 1 : i32
    %55 = vector.broadcast %c1_i32_17 : i32 to vector<32x1xi32>
    %56 = arith.cmpi sge, %53, %55 : vector<32x1xi32>
    %cst_18 = arith.constant 0.000000e+00 : f32
    %57 = vector.shape_cast %56 : vector<32x1xi1> to vector<32x1xi1>
    %58 = vector.broadcast %57 : vector<32x1xi1> to vector<32x128xi1>
    %59 = vector.broadcast %cst_18 : f32 to vector<32x128xf32>
    %60 = arith.select %58, %54, %59 : vector<32x128xi1>, vector<32x128xf32>
    %61 = arith.truncf %60 : vector<32x128xf32> to vector<32x128xbf16>
    %62 = arith.truncf %36 : vector<32x128xf32> to vector<32x128xbf16>
    %c31_i32 = arith.constant 31 : i32
    %63 = tpu.dynamic_rotate %36 by %c31_i32 dim 0 : vector<32x128xf32>, i32 -> vector<32x128xf32>
    %c15_i32 = arith.constant 15 : i32
    %64 = vector.broadcast %c15_i32 : i32 to vector<32x1xi32>
    %65 = arith.cmpi slt, %53, %64 : vector<32x1xi32>
    %cst_19 = arith.constant 0.000000e+00 : f32
    %66 = vector.shape_cast %65 : vector<32x1xi1> to vector<32x1xi1>
    %67 = vector.broadcast %66 : vector<32x1xi1> to vector<32x128xi1>
    %68 = vector.broadcast %cst_19 : f32 to vector<32x128xf32>
    %69 = arith.select %67, %63, %68 : vector<32x128xi1>, vector<32x128xf32>
    %70 = arith.truncf %69 : vector<32x128xf32> to vector<32x128xbf16>
    %71 = tpu.concatenate %61, %62, %70 in 1 : vector<32x128xbf16>, vector<32x128xbf16>, vector<32x128xbf16> -> vector<32x384xbf16>
    %c0_20 = arith.constant 0 : index
    %c0_21 = arith.constant 0 : index
    %72 = vector.load %arg3[%c0_20, %c0_21] : memref<384x128xbf16, #tpu.memory_space<vmem>>, vector<384x128xbf16>
    %cst_22 = arith.constant dense<0.000000e+00> : vector<32x128xf32>
    %73 = tpu.matmul %71, %72, %cst_22 {dimension_numbers = #tpu.dot_dimension_numbers<[1], [0], [0], [1], [0, 0, 1, 1], [], []>} : vector<32x384xbf16>, vector<384x128xbf16>, vector<32x128xf32> -> vector<32x128xf32>
    %c0_23 = arith.constant 0 : index
    %c0_24 = arith.constant 0 : index
    %74 = vector.load %arg7[%c0_23, %c0_24] : memref<1x128xf32, #tpu.memory_space<vmem>>, vector<1x128xf32>
    %c0_25 = arith.constant 0 : index
    %c0_26 = arith.constant 0 : index
    %75 = vector.load %arg8[%c0_25, %c0_26] : memref<1x128xf32, #tpu.memory_space<vmem>>, vector<1x128xf32>
    %cst_27 = arith.constant dense<0.000000e+00> : vector<128xf32>
    %76 = vector.multi_reduction <add>, %73, %cst_27 [0] : vector<32x128xf32> to vector<128xf32>
    %77 = vector.shape_cast %76 : vector<128xf32> to vector<1x128xf32>
    %78 = arith.mulf %73, %73 : vector<32x128xf32>
    %cst_28 = arith.constant dense<0.000000e+00> : vector<128xf32>
    %79 = vector.multi_reduction <add>, %78, %cst_28 [0] : vector<32x128xf32> to vector<128xf32>
    %80 = vector.shape_cast %79 : vector<128xf32> to vector<1x128xf32>
    %81 = tpu.concatenate %77, %80 in 0 : vector<1x128xf32>, vector<1x128xf32> -> vector<2x128xf32>
    %c8_i32_29 = arith.constant 8 : i32
    %82 = tpu.dynamic_rotate %81 by %c8_i32_29 dim 1 : vector<2x128xf32>, i32 -> vector<2x128xf32>
    %83 = arith.addf %81, %82 : vector<2x128xf32>
    %c16_i32_30 = arith.constant 16 : i32
    %84 = tpu.dynamic_rotate %83 by %c16_i32_30 dim 1 : vector<2x128xf32>, i32 -> vector<2x128xf32>
    %85 = arith.addf %83, %84 : vector<2x128xf32>
    %c32_i32_31 = arith.constant 32 : i32
    %86 = tpu.dynamic_rotate %85 by %c32_i32_31 dim 1 : vector<2x128xf32>, i32 -> vector<2x128xf32>
    %87 = arith.addf %85, %86 : vector<2x128xf32>
    %c64_i32_32 = arith.constant 64 : i32
    %88 = tpu.dynamic_rotate %87 by %c64_i32_32 dim 1 : vector<2x128xf32>, i32 -> vector<2x128xf32>
    %89 = arith.addf %87, %88 : vector<2x128xf32>
    %cst_33 = arith.constant 0.001953125 : f32
    %90 = vector.broadcast %cst_33 : f32 to vector<2x128xf32>
    %91 = arith.mulf %89, %90 : vector<2x128xf32>
    %92 = vector.extract_strided_slice %91 {offsets = [0, 0], sizes = [1, 128], strides = [1, 1]} : vector<2x128xf32> to vector<1x128xf32>
    %93 = vector.extract_strided_slice %91 {offsets = [1, 0], sizes = [1, 128], strides = [1, 1]} : vector<2x128xf32> to vector<1x128xf32>
    %94 = arith.mulf %92, %92 : vector<1x128xf32>
    %95 = arith.subf %93, %94 : vector<1x128xf32>
    %cst_34 = arith.constant 9.99999974E-6 : f32
    %96 = vector.broadcast %cst_34 : f32 to vector<1x128xf32>
    %97 = arith.addf %95, %96 : vector<1x128xf32>
    %98 = math.rsqrt %97 : vector<1x128xf32>
    %99 = arith.mulf %74, %98 : vector<1x128xf32>
    %100 = arith.mulf %92, %99 : vector<1x128xf32>
    %101 = arith.subf %75, %100 : vector<1x128xf32>
    %102 = vector.broadcast %99 : vector<1x128xf32> to vector<32x128xf32>
    %103 = arith.mulf %73, %102 : vector<32x128xf32>
    %104 = vector.broadcast %101 : vector<1x128xf32> to vector<32x128xf32>
    %105 = arith.addf %103, %104 : vector<32x128xf32>
    %cst_35 = arith.constant 0.000000e+00 : f32
    %106 = vector.broadcast %cst_35 : f32 to vector<32x128xf32>
    %107 = arith.maximumf %105, %106 : vector<32x128xf32>
    %108 = arith.truncf %107 : vector<32x128xf32> to vector<32x128xbf16>
    %c0_36 = arith.constant 0 : index
    %c0_37 = arith.constant 0 : index
    %109 = vector.load %arg4[%c0_36, %c0_37] : memref<128x512xbf16, #tpu.memory_space<vmem>>, vector<128x512xbf16>
    %cst_38 = arith.constant dense<0.000000e+00> : vector<32x512xf32>
    %110 = tpu.matmul %108, %109, %cst_38 {dimension_numbers = #tpu.dot_dimension_numbers<[1], [0], [0], [1], [0, 0, 1, 1], [], []>} : vector<32x128xbf16>, vector<128x512xbf16>, vector<32x512xf32> -> vector<32x512xf32>
    %c0_39 = arith.constant 0 : index
    %c0_40 = arith.constant 0 : index
    %111 = vector.load %arg9[%c0_39, %c0_40] : memref<1x512xf32, #tpu.memory_space<vmem>>, vector<1x512xf32>
    %c0_41 = arith.constant 0 : index
    %c0_42 = arith.constant 0 : index
    %112 = vector.load %arg10[%c0_41, %c0_42] : memref<1x512xf32, #tpu.memory_space<vmem>>, vector<1x512xf32>
    %cst_43 = arith.constant dense<0.000000e+00> : vector<512xf32>
    %113 = vector.multi_reduction <add>, %110, %cst_43 [0] : vector<32x512xf32> to vector<512xf32>
    %114 = vector.shape_cast %113 : vector<512xf32> to vector<1x512xf32>
    %115 = arith.mulf %110, %110 : vector<32x512xf32>
    %cst_44 = arith.constant dense<0.000000e+00> : vector<512xf32>
    %116 = vector.multi_reduction <add>, %115, %cst_44 [0] : vector<32x512xf32> to vector<512xf32>
    %117 = vector.shape_cast %116 : vector<512xf32> to vector<1x512xf32>
    %118 = tpu.concatenate %114, %117 in 0 : vector<1x512xf32>, vector<1x512xf32> -> vector<2x512xf32>
    %c32_i32_45 = arith.constant 32 : i32
    %119 = tpu.dynamic_rotate %118 by %c32_i32_45 dim 1 : vector<2x512xf32>, i32 -> vector<2x512xf32>
    %120 = arith.addf %118, %119 : vector<2x512xf32>
    %c64_i32_46 = arith.constant 64 : i32
    %121 = tpu.dynamic_rotate %120 by %c64_i32_46 dim 1 : vector<2x512xf32>, i32 -> vector<2x512xf32>
    %122 = arith.addf %120, %121 : vector<2x512xf32>
    %c128_i32 = arith.constant 128 : i32
    %123 = tpu.dynamic_rotate %122 by %c128_i32 dim 1 : vector<2x512xf32>, i32 -> vector<2x512xf32>
    %124 = arith.addf %122, %123 : vector<2x512xf32>
    %c256_i32 = arith.constant 256 : i32
    %125 = tpu.dynamic_rotate %124 by %c256_i32 dim 1 : vector<2x512xf32>, i32 -> vector<2x512xf32>
    %126 = arith.addf %124, %125 : vector<2x512xf32>
    %cst_47 = arith.constant 0.001953125 : f32
    %127 = vector.broadcast %cst_47 : f32 to vector<2x512xf32>
    %128 = arith.mulf %126, %127 : vector<2x512xf32>
    %129 = vector.extract_strided_slice %128 {offsets = [0, 0], sizes = [1, 512], strides = [1, 1]} : vector<2x512xf32> to vector<1x512xf32>
    %130 = vector.extract_strided_slice %128 {offsets = [1, 0], sizes = [1, 512], strides = [1, 1]} : vector<2x512xf32> to vector<1x512xf32>
    %131 = arith.mulf %129, %129 : vector<1x512xf32>
    %132 = arith.subf %130, %131 : vector<1x512xf32>
    %cst_48 = arith.constant 9.99999974E-6 : f32
    %133 = vector.broadcast %cst_48 : f32 to vector<1x512xf32>
    %134 = arith.addf %132, %133 : vector<1x512xf32>
    %135 = math.rsqrt %134 : vector<1x512xf32>
    %136 = arith.mulf %111, %135 : vector<1x512xf32>
    %137 = arith.mulf %129, %136 : vector<1x512xf32>
    %138 = arith.subf %112, %137 : vector<1x512xf32>
    %139 = vector.broadcast %136 : vector<1x512xf32> to vector<32x512xf32>
    %140 = arith.mulf %110, %139 : vector<32x512xf32>
    %141 = vector.broadcast %138 : vector<1x512xf32> to vector<32x512xf32>
    %142 = arith.addf %140, %141 : vector<32x512xf32>
    %143 = arith.extf %0 : vector<32x512xbf16> to vector<32x512xf32>
    %144 = arith.addf %142, %143 : vector<32x512xf32>
    %cst_49 = arith.constant 0.000000e+00 : f32
    %145 = vector.broadcast %cst_49 : f32 to vector<32x512xf32>
    %146 = arith.maximumf %144, %145 : vector<32x512xf32>
    %c0_50 = arith.constant 0 : index
    %c0_51 = arith.constant 0 : index
    %147 = vector.load %arg11[%c0_50, %c0_51] : memref<32x512xf32, #tpu.memory_space<vmem>>, vector<32x512xf32>
    tpu.vector_store %arg11[%c0_50, %c0_51], %146 {strides = array<i32>} : memref<32x512xf32, #tpu.memory_space<vmem>>, vector<32x512xf32>,
    return
  }
  func.func @transform_0(%arg0: i32) -> (i32, i32) {
    %c0_i32 = arith.constant 0 : i32
    %c0_i32_0 = arith.constant 0 : i32
    %c0_i32_1 = arith.constant 0 : i32
    return %c0_i32, %c0_i32_0 : i32, i32
  }
  func.func @transform_1(%arg0: i32) -> (i32, i32) {
    %c0_i32 = arith.constant 0 : i32
    %c0_i32_0 = arith.constant 0 : i32
    %c0_i32_1 = arith.constant 0 : i32
    return %c0_i32, %c0_i32_0 : i32, i32
  }
  func.func @transform_2(%arg0: i32) -> (i32, i32) {
    %c0_i32 = arith.constant 0 : i32
    %c0_i32_0 = arith.constant 0 : i32
    %c0_i32_1 = arith.constant 0 : i32
    return %c0_i32, %c0_i32_0 : i32, i32
  }
  func.func @transform_3(%arg0: i32) -> (i32, i32) {
    %c0_i32 = arith.constant 0 : i32
    %c0_i32_0 = arith.constant 0 : i32
    %c0_i32_1 = arith.constant 0 : i32
    return %c0_i32, %c0_i32_0 : i32, i32
  }
  func.func @transform_4(%arg0: i32) -> (i32, i32) {
    %c0_i32 = arith.constant 0 : i32
    %c0_i32_0 = arith.constant 0 : i32
    %c0_i32_1 = arith.constant 0 : i32
    return %c0_i32, %c0_i32_0 : i32, i32
  }
  func.func @transform_5(%arg0: i32) -> (i32, i32) {
    %c0_i32 = arith.constant 0 : i32
    %c0_i32_0 = arith.constant 0 : i32
    %c0_i32_1 = arith.constant 0 : i32
    return %c0_i32, %c0_i32_0 : i32, i32
  }
  func.func @transform_6(%arg0: i32) -> (i32, i32) {
    %c0_i32 = arith.constant 0 : i32
    %c0_i32_0 = arith.constant 0 : i32
    %c0_i32_1 = arith.constant 0 : i32
    return %c0_i32, %c0_i32_0 : i32, i32
  }
  func.func @transform_7(%arg0: i32) -> (i32, i32) {
    %c0_i32 = arith.constant 0 : i32
    %c0_i32_0 = arith.constant 0 : i32
    %c0_i32_1 = arith.constant 0 : i32
    return %c0_i32, %c0_i32_0 : i32, i32
  }
  func.func @transform_8(%arg0: i32) -> (i32, i32) {
    %c0_i32 = arith.constant 0 : i32
    %c0_i32_0 = arith.constant 0 : i32
    %c0_i32_1 = arith.constant 0 : i32
    return %c0_i32, %c0_i32_0 : i32, i32
  }
  func.func @transform_9(%arg0: i32) -> (i32, i32) {
    %c0_i32 = arith.constant 0 : i32
    %c0_i32_0 = arith.constant 0 : i32
    %c0_i32_1 = arith.constant 0 : i32
    return %c0_i32, %c0_i32_0 : i32, i32
  }
  func.func @transform_10(%arg0: i32) -> (i32, i32) {
    %c0_i32 = arith.constant 0 : i32
    %c0_i32_0 = arith.constant 0 : i32
    %c0_i32_1 = arith.constant 0 : i32
    return %c0_i32, %c0_i32_0 : i32, i32
  }
}

</mosaic_0001>

<bundles_post_ra>
// kernel: resnet_bottleneck.1
= control target key start
LH: loop header
LB: loop body
LE: loop exit
PB: predicated region body
PF: predicated region fallthrough
CT: control target
= control target key end

     0   :  { %vm462_vm0 = vcmask 1040384   ;;  %s2021_s12 = smov 8   ;;  %s2022_s13 = smov 16   ;;  %vm2026_vm6 = vmmov 1   ;;  %s2727_s1 = inlined_call_operand.vmem [shape: bf16[512,128], index: 1, kind: input, shape index: {}]   ;;  %s2728_s0 = inlined_call_operand.vmem [shape: bf16[32,512], index: 0, kind: input, shape index: {}]   ;;  %s2729_s2 = inlined_call_operand.vmem [shape: bf16[384,128], index: 2, kind: input, shape index: {}]   ;;  %s2730_s4 = inlined_call_operand.vmem [shape: f32[1,128], index: 4, kind: input, shape index: {}]   ;;  %s2731_s5 = inlined_call_operand.vmem [shape: f32[1,128], index: 5, kind: input, shape index: {}]   ;;  %s2732_s3 = inlined_call_operand.vmem [shape: bf16[128,512], index: 3, kind: input, shape index: {}]   ;;  %s2733_s6 = inlined_call_operand.vmem [shape: f32[1,128], index: 6, kind: input, shape index: {}]   ;;  %s2734_s7 = inlined_call_operand.vmem [shape: f32[1,128], index: 7, kind: input, shape index: {}]   ;;  %s2735_s8 = inlined_call_operand.vmem [shape: f32[1,512], index: 8, kind: input, shape index: {}]   ;;  %s2736_s9 = inlined_call_operand.vmem [shape: f32[1,512], index: 9, kind: input, shape index: {}]   ;;  %s2737_s10 = inlined_call_operand.vmem [shape: f32[32,512], index: 10, kind: output, shape index: {}]  }
   0x1   :  { %v1893_v0 = vld [vmem:[%s2727_s1 + $0x40] sm:$0xff]   ;;  %v1897_v4 = vld [vmem:[%s2727_s1 + $0x48] sm:$0xff]   ;;  %v1901_v8 = vld [vmem:[%s2727_s1 + $0x50] sm:$0xff]   ;;  %s2023_s14 = smov 32   ;;  %s2024_s17 = smov 64  }
   0x2   :  { %v1894_v1 = vld [vmem:[%s2727_s1 + $0xc0] sm:$0xff]   ;;  %1772 = vmatprep.subr.bf16.mxu0 %v1893_v0  ;;  %v1898_v5 = vld [vmem:[%s2727_s1 + $0xc8] sm:$0xff]   ;;  %v1902_v9 = vld [vmem:[%s2727_s1 + $0xd0] sm:$0xff]  }
   0x3   :  { %v1895_v2 = vld [vmem:[%s2727_s1] sm:$0xff]   ;;  %1800 = vmatprep.subr.bf16.mxu1 %v1894_v1  ;;  %v1899_v6 = vld [vmem:[%s2727_s1 + $0x8] sm:$0xff]   ;;  %v1903_v10 = vld [vmem:[%s2727_s1 + $0x10] sm:$0xff]  }
   0x4   :  { %v1896_v3 = vld [vmem:[%s2727_s1 + $0x80] sm:$0xff]   ;;  %1773 = vmatpush3.bf16.msra.mxu0 %v1895_v2  ;;  %v1900_v7 = vld [vmem:[%s2727_s1 + $0x88] sm:$0xff]   ;;  %v1904_v11 = vld [vmem:[%s2727_s1 + $0x90] sm:$0xff]  }
   0x5   :  { %1801 = vmatpush3.bf16.msra.mxu1 %v1896_v3  ;;  %1774 = vmatprep.subr.bf16.mxu0 %v1897_v4  ;;  %v1905_v12 = vld [vmem:[%s2727_s1 + $0x58] sm:$0xff]   ;;  %v1909_v16 = vld [vmem:[%s2727_s1 + $0x60] sm:$0xff]   ;;  %v1913_v20 = vld [vmem:[%s2727_s1 + $0x68] sm:$0xff]  }
   0x6   :  { %1802 = vmatprep.subr.bf16.mxu1 %v1898_v5  ;;  %v1906_v13 = vld [vmem:[%s2727_s1 + $0xd8] sm:$0xff]   ;;  %v1910_v17 = vld [vmem:[%s2727_s1 + $0xe0] sm:$0xff]   ;;  %v1914_v21 = vld [vmem:[%s2727_s1 + $0xe8] sm:$0xff]  }
   0x7   :  { %v1907_v14 = vld [vmem:[%s2727_s1 + $0x18] sm:$0xff]   ;;  %v1911_v18 = vld [vmem:[%s2727_s1 + $0x20] sm:$0xff]   ;;  %v1915_v22 = vld [vmem:[%s2727_s1 + $0x28] sm:$0xff]  }
   0x8   :  { %1775 = vmatpush3.bf16.msra.mxu0 %v1899_v6  ;;  %v1908_v15 = vld [vmem:[%s2727_s1 + $0x98] sm:$0xff]   ;;  %v1912_v19 = vld [vmem:[%s2727_s1 + $0xa0] sm:$0xff]   ;;  %v1916_v23 = vld [vmem:[%s2727_s1 + $0xa8] sm:$0xff]  }
   0x9   :  { %1803 = vmatpush3.bf16.msra.mxu1 %v1900_v7  ;;  %1776 = vmatprep.subr.bf16.mxu0 %v1901_v8  ;;  %v1917_v24 = vld [vmem:[%s2727_s1 + $0x70] sm:$0xff]   ;;  %v1921_v28 = vld [vmem:[%s2727_s1 + $0x78] sm:$0xff]   ;;  %v36_v32 = vld [vmem:[%s2728_s0] sm:$0xff] }
   0xa   :  { %1804 = vmatprep.subr.bf16.mxu1 %v1902_v9  ;;  %v1918_v25 = vld [vmem:[%s2727_s1 + $0xf0] sm:$0xff]   ;;  %v1922_v29 = vld [vmem:[%s2727_s1 + $0xf8] sm:$0xff]   ;;  %v37_v34 = vld [vmem:[%s2728_s0 + $0x8] sm:$0xff] }
   0xb   :  { %v1919_v26 = vld [vmem:[%s2727_s1 + $0x30] sm:$0xff]   ;;  %v1923_v30 = vld [vmem:[%s2727_s1 + $0x38] sm:$0xff]   ;;  %v40_v37 = vld [vmem:[%s2728_s0 + $0x20] sm:$0xff] }
   0xc   :  { %1777 = vmatpush3.bf16.msra.mxu0 %v1903_v10  ;;  %v1920_v27 = vld [vmem:[%s2727_s1 + $0xb0] sm:$0xff]   ;;  %v1924_v31 = vld [vmem:[%s2727_s1 + $0xb8] sm:$0xff]   ;;  %v41_v40 = vld [vmem:[%s2728_s0 + $0x28] sm:$0xff] }
   0xd   :  { %1805 = vmatpush3.bf16.msra.mxu1 %v1904_v11  ;;  %1778 = vmatprep.subr.bf16.mxu0 %v1905_v12  ;;  %v38_v33 = vld [vmem:[%s2728_s0 + $0x10] sm:$0xff]  ;;  %v39_v36 = vld [vmem:[%s2728_s0 + $0x18] sm:$0xff] }
   0xe   :  { %1806 = vmatprep.subr.bf16.mxu1 %v1906_v13  ;;  %v1665_v35 = vcombine.high %v36_v32, %v38_v33  ;;  %v42_v38 = vld [vmem:[%s2728_s0 + $0x30] sm:$0xff]  ;;  %v1667_v39 = vcombine.high %v37_v34, %v39_v36  ;;  %v43_v41 = vld [vmem:[%s2728_s0 + $0x38] sm:$0xff]  ;;  %v1664_v42 = vcombine.low %v36_v32, %v38_v33  ;;  %v1666_v43 = vcombine.low %v37_v34, %v39_v36 }
   0xf   :  { %v1669_v44 = vcombine.high %v40_v37, %v42_v38  ;;  %v1671_v45 = vcombine.high %v41_v40, %v43_v41  ;;  %v1668_v46 = vcombine.low %v40_v37, %v42_v38  ;;  %v1670_v47 = vcombine.low %v41_v40, %v43_v41  ;;  %v1933_v41 = vld [vmem:[%s2729_s2 + $0x40] sm:$0xff]  }
  0x10   :  { %1779 = vmatpush3.bf16.msra.mxu0 %v1907_v14  ;;  %372 = vmatprep.mubr.bf16.mxu0 %v1665_v35 }
  0x11   :  { %1807 = vmatpush3.bf16.msra.mxu1 %v1908_v15  ;;  %1780 = vmatprep.subr.bf16.mxu0 %v1909_v16 }
  0x12   :  { %1808 = vmatprep.subr.bf16.mxu1 %v1910_v17  ;;  %421 = vmatprep.mubr.bf16.mxu1 %v1667_v39 }
  0x14   :  { %1781 = vmatpush3.bf16.msra.mxu0 %v1911_v18 }
  0x15   :  { %1809 = vmatpush3.bf16.msra.mxu1 %v1912_v19  ;;  %1782 = vmatprep.subr.bf16.mxu0 %v1913_v20 }
  0x16   :  { %1810 = vmatprep.subr.bf16.mxu1 %v1914_v21 }
  0x18   :  { %1783 = vmatpush3.bf16.msra.mxu0 %v1915_v22 }
  0x19   :  { %1811 = vmatpush3.bf16.msra.mxu1 %v1916_v23  ;;  %1784 = vmatprep.subr.bf16.mxu0 %v1917_v24 }
  0x1a   :  { %1812 = vmatprep.subr.bf16.mxu1 %v1918_v25 }
  0x1c   :  { %1785 = vmatpush3.bf16.msra.mxu0 %v1919_v26 }
  0x1d   :  { %1813 = vmatpush3.bf16.msra.mxu1 %v1920_v27  ;;  %1786 = vmatprep.subr.bf16.mxu0 %v1921_v28 }
  0x1e   :  { %1814 = vmatprep.subr.bf16.mxu1 %v1922_v29 }
  0x20   :  { %1787 = vmatpush3.bf16.msra.mxu0 %v1923_v30 }
  0x21   :  { %1815 = vmatpush3.bf16.msra.mxu1 %v1924_v31  ;;  %1828 = vmatprep.subr.bf16.mxu0 %v1933_v41 }
  0x23   :  { %373 = vmatmul.mubr.bf16.vlgmr.msra.gmra.mrb[0].mxu0 %v1664_v42  ;;  %v1934_v42 = vld [vmem:[%s2729_s2] sm:$0xff]  }
  0x24   :  { %422 = vmatmul.mubr.bf16.vlgmr.msra.gmra.mrb[0].mxu1 %v1666_v43  ;;  %380 = vmatprep.mubr.bf16.mxu0 %v1669_v44  ;;  %v1935_v43 = vld [vmem:[%s2729_s2 + $0x80] sm:$0xff]   ;;  %v1936_v44 = vld [vmem:[%s2729_s2 + $0x48] sm:$0xff]  }
  0x25   :  { %429 = vmatprep.mubr.bf16.mxu1 %v1671_v45  ;;  %1829 = vmatpush3.bf16.msra.mxu0 %v1934_v42  ;;  %v1937_v45 = vld [vmem:[%s2729_s2 + $0x8] sm:$0xff]  }
  0x26   :  { %1866 = vmatprep.subr.bf16.mxu1 %v1935_v43  ;;  %1830 = vmatprep.subr.bf16.mxu0 %v1936_v44 }
  0x27   :  { %1867 = vmatpush3.bf16.msra.mxu1 %v1935_v43 }
  0x29   :  { %1831 = vmatpush3.bf16.msra.mxu0 %v1937_v45 }
  0x2b   :  { %381 = vmatmul.mubr.bf16.gmra.mrb[4].mxu0 %v1668_v46  ;;  %v1938_v46 = vld [vmem:[%s2729_s2 + $0x88] sm:$0xff]  }
  0x2c   :  { %430 = vmatmul.mubr.bf16.gmra.mrb[4].mxu1 %v1670_v47  ;;  %1868 = vmatprep.subr.bf16.mxu1 %v1938_v46  ;;  %v1939_v47 = vld [vmem:[%s2729_s2 + $0x50] sm:$0xff]  }
  0x2d   :  { %1869 = vmatpush3.bf16.msra.mxu1 %v1938_v46  ;;  %1832 = vmatprep.subr.bf16.mxu0 %v1939_v47 }
  0xf6   :  { %v1788_v48 = vpop.f32.mrb[0].mxu0 }
  0xf7   :  { %v1816_v49 = vpop.f32.mrb[0].mxu1  ;;  %v1789_v50 = vpop.f32.mrb[1].mxu0 }
  0xf8   :  { %v1817_v51 = vpop.f32.mrb[1].mxu1  ;;  %v1790_v52 = vadd.f32 %v1789_v50, %v1788_v48  ;;  %v1791_v54 = vpop.f32.mrb[2].mxu0  ;;  %v1940_v48 = vld [vmem:[%s2729_s2 + $0x10] sm:$0xff]   ;;  %v1942_v50 = vld [vmem:[%s2729_s2 + $0x58] sm:$0xff]  }
  0xf9   :  { %v1818_v53 = vadd.f32 %v1817_v51, %v1816_v49  ;;  %v1819_v55 = vpop.f32.mrb[2].mxu1  ;;  %v1792_v56 = vpop.f32.mrb[3].mxu0  ;;  %v1941_v49 = vld [vmem:[%s2729_s2 + $0x90] sm:$0xff]   ;;  %1833 = vmatpush3.bf16.msra.mxu0 %v1940_v48  ;;  %v1943_v51 = vld [vmem:[%s2729_s2 + $0x18] sm:$0xff]  }
  0xfa   :  { %v1820_v57 = vpop.f32.mrb[3].mxu1  ;;  %v1793_v59 = vadd.f32 %v1792_v56, %v1791_v54  ;;  %1870 = vmatprep.subr.bf16.mxu1 %v1941_v49  ;;  %1834 = vmatprep.subr.bf16.mxu0 %v1942_v50  ;;  %v1946_v54 = vld [vmem:[%s2729_s2 + $0x20] sm:$0xff]   ;;  %v1948_v56 = vld [vmem:[%s2729_s2 + $0x68] sm:$0xff]  }
  0xfb   :  { %v2203_v58 = vadd.f32 %v1818_v53, %v1790_v52  ;;  %v1821_v60 = vadd.f32 %v1820_v57, %v1819_v55  ;;  %1871 = vmatpush3.bf16.msra.mxu1 %v1941_v49  ;;  %v1944_v52 = vld [vmem:[%s2729_s2 + $0x98] sm:$0xff]   ;;  %v1945_v53 = vld [vmem:[%s2729_s2 + $0x60] sm:$0xff]   ;;  %v1949_v57 = vld [vmem:[%s2729_s2 + $0x28] sm:$0xff]  }
  0xfc   :  { %1872 = vmatprep.subr.bf16.mxu1 %v1944_v52  ;;  %v1947_v55 = vld [vmem:[%s2729_s2 + $0xa0] sm:$0xff]  }
  0xfd   :  { %v2205_v61 = vadd.f32 %v1821_v60, %v1793_v59  ;;  %v449_v7 = vmul.f32 %v2203_v58, %v2203_v58  ;;  %1835 = vmatpush3.bf16.msra.mxu0 %v1943_v51  ;;  %v1950_v59 = vld [vmem:[%s2729_s2 + $0xa8] sm:$0xff]   ;;  %v1951_v60 = vld [vmem:[%s2729_s2 + $0x70] sm:$0xff]  }
  0xfe   :  { %v1794_v62 = vpop.f32.mrb[4].mxu0  ;;  %1836 = vmatprep.subr.bf16.mxu0 %v1945_v53 }
  0xff   :  { %v1822_v63 = vpop.f32.mrb[4].mxu1  ;;  %v1795_v0 = vpop.f32.mrb[5].mxu0  ;;  %v450_v2 = vmul.f32 %v2205_v61, %v2205_v61  ;;  %v440_v10 = vadd.f32 %v2205_v61, %v2203_v58  ;;  %1873 = vmatpush3.bf16.msra.mxu1 %v1944_v52 }
 0x100   :  { %v1823_v1 = vpop.f32.mrb[5].mxu1  ;;  %v1796_v3 = vadd.f32 %v1795_v0, %v1794_v62  ;;  %v1797_v5 = vpop.f32.mrb[6].mxu0  ;;  %1874 = vmatprep.subr.bf16.mxu1 %v1947_v55  ;;  %v1952_v62 = vld [vmem:[%s2729_s2 + $0x30] sm:$0xff]   ;;  %v1954_v0 = vld [vmem:[%s2729_s2 + $0x78] sm:$0xff]  }
 0x101   :  { %v1824_v4 = vadd.f32 %v1823_v1, %v1822_v63  ;;  %v1825_v6 = vpop.f32.mrb[6].mxu1  ;;  %v1798_v8 = vpop.f32.mrb[7].mxu0  ;;  %v453_v14 = vadd.f32 %v450_v2, %v449_v7  ;;  %1837 = vmatpush3.bf16.msra.mxu0 %v1946_v54  ;;  %v1953_v63 = vld [vmem:[%s2729_s2 + $0xb0] sm:$0xff]   ;;  %v1955_v1 = vld [vmem:[%s2729_s2 + $0x38] sm:$0xff]  }
 0x102   :  { %v1826_v9 = vpop.f32.mrb[7].mxu1  ;;  %v1799_v12 = vadd.f32 %v1798_v8, %v1797_v5  ;;  %1838 = vmatprep.subr.bf16.mxu0 %v1948_v56  ;;  %v1956_v2 = vld [vmem:[%s2729_s2 + $0xb8] sm:$0xff]  }
 0x103   :  { %v2213_v11 = vadd.f32 %v1824_v4, %v1796_v3  ;;  %v1827_v13 = vadd.f32 %v1826_v9, %v1825_v6  ;;  %1875 = vmatpush3.bf16.msra.mxu1 %v1947_v55 }
 0x104   :  { %1876 = vmatprep.subr.bf16.mxu1 %v1950_v59 }
 0x105   :  { %v441_v15 = vadd.f32 %v440_v10, %v2213_v11  ;;  %v451_v16 = vmul.f32 %v2213_v11, %v2213_v11  ;;  %v2218_v17 = vadd.f32 %v1827_v13, %v1799_v12  ;;  %1839 = vmatpush3.bf16.msra.mxu0 %v1949_v57  ;;  %v2025_v10 = vmov 1966171168  }
 0x106   :  { %1840 = vmatprep.subr.bf16.mxu0 %v1951_v60  ;;  %v486_v12 = vunpack.c.l.s4 %v2025_v10  ;;  %v488_v13 = vlaneseq }
 0x107   :  { %v454_v18 = vadd.f32 %v453_v14, %v451_v16  ;;  %v442_v19 = vadd.f32 %v441_v15, %v2218_v17  ;;  %v452_v20 = vmul.f32 %v2218_v17, %v2218_v17  ;;  %1877 = vmatpush3.bf16.msra.mxu1 %v1950_v59 }
 0x108   :  { %1878 = vmatprep.subr.bf16.mxu1 %v1953_v63  ;;  %v487_v14 = vunpack.c.0.s8 %v486_v12  ;;  %v2301_v15 = vshrl.u32 %v488_v13, 7 }
 0x109   :  { %v443_v21 = vrot.slane %v442_v19, 4  ;;  %v455_v22 = vadd.f32 %v454_v18, %v452_v20  ;;  %1841 = vmatpush3.bf16.msra.mxu0 %v1952_v62 }
 0x10a   :  { %1842 = vmatprep.subr.bf16.mxu0 %v1954_v0  ;;  %v2304_v16 = vsub.s32 %v487_v14, %v2301_v15  ;;  %vm585_vm1 = vcmp.lt.s32.totalorder %v2301_v15, 1  ;;  %vm614_vm3 = vcmp.lt.s32.totalorder %v2301_v15, 7 }
 0x10b   :  { %v444_v23 = vadd.f32 %v443_v21, %v442_v19  ;;  %v456_v24 = vrot.slane %v455_v22, 4  ;;  %1879 = vmatpush3.bf16.msra.mxu1 %v1953_v63  ;;  %v438_v21 = vld [vmem:[%s2730_s4] sm:$0x1] }
 0x10c   :  { %1880 = vmatprep.subr.bf16.mxu1 %v1956_v2 }
 0x10d   :  { %v445_v25 = vrot.slane %v444_v23, 2  ;;  %v457_v26 = vadd.f32 %v456_v24, %v455_v22  ;;  %1843 = vmatpush3.bf16.msra.mxu0 %v1955_v1  ;;  %v2311_v22 = vsub.s32 0, %v2301_v15 }
 0x10f   :  { %v446_v27 = vadd.f32 %v445_v25, %v444_v23  ;;  %v458_v28 = vrot.slane %v457_v26, 2  ;;  %1881 = vmatpush3.bf16.msra.mxu1 %v1956_v2  ;;  %v439_v25 = vld [vmem:[%s2731_s5] sm:$0x1] }
 0x111   :  { %v447_v29 = vrot.slane %v446_v27, 1  ;;  %v459_v30 = vadd.f32 %v458_v28, %v457_v26  ;;  %v530_v28 = vadd.s32 8, %v2301_v15 }
 0x113   :  { %v460_v31 = vrot.slane %v459_v30, 1  ;;  %v448_v32 = vadd.f32 %v447_v29, %v446_v27  ;;  %v532_v29 = vadd.s32 24, %v2301_v15 }
 0x115   :  { %v461_v33 = vadd.f32 %v460_v31, %v459_v30 }
 0x117   :  { %v463_v34 = vsel %vm462_vm0, %v448_v32, %v461_v33 }
 0x118   :  { %464 = vrot.lane.b32.xlu0 %v463_v34, %s2021_s12 }
 0x18a   :  { %v465_v35 = vpop.permute.xlu0 %464 }
 0x18b   :  { %v466_v36 = vadd.f32 %v465_v35, %v463_v34 }
 0x18d   :  { %467 = vrot.lane.b32.xlu0 %v466_v36, %s2022_s13 }
 0x1ff   :  { %v468_v37 = vpop.permute.xlu0 %467 }
 0x200   :  { %v469_v38 = vadd.f32 %v468_v37, %v466_v36  ;;  %v537_v36 = vand.u32 15, %v2301_v15  ;;  %v544_v37 = vand.u32 15, %v530_v28 }
 0x202   :  { %470 = vrot.lane.b32.xlu1 %v469_v38, %s2023_s14  ;;  %vm2328_vm2 = vcmp.ge.s32.totalorder %v537_v36, 1  ;;  %vm2333_vm4 = vcmp.lt.s32.totalorder %v544_v37, 15 }
 0x203   :  { %vm1728_vm7 = vmpackc.low %vm2026_vm6, %vm2328_vm2 }
 0x204   :  { %vm1734_vm8 = vmpackc.low %vm2333_vm4, %vm2026_vm6 }
 0x274   :  { %v471_v39 = vpop.permute.xlu1 %470 }
 0x275   :  { %v472_v40 = vadd.f32 %v471_v39, %v469_v38  ;;  %v558_v38 = vand.u32 15, %v532_v29 }
 0x277   :  { %473 = vrot.lane.b32.xlu1 %v472_v40, %s2024_s17  ;;  %vm2337_vm5 = vcmp.lt.s32.totalorder %v558_v38, 15 }
 0x278   :  { %vm1737_vm9 = vmpackc.low %vm2337_vm5, %vm2026_vm6 }
 0x2e9   :  { %v474_v3 = vpop.permute.xlu1 %473 }
 0x2ea   :  { %v475_v4 = vadd.f32 %v474_v3, %v472_v40 }
 0x2ec   :  { %v476_v5 = vmul.f32 0.001953125, %v475_v4 }
 0x2ee   :  { %v477_v6 = vmul.f32 %v476_v5, %v476_v5 }
 0x2f0   :  { %v479_v7 = vrot.slane %v477_v6, 7 }
 0x2f2   :  { %v481_v8 = vsub.f32 %v476_v5, %v479_v7 }
 0x2f4   :  { %v482_v9 = vadd.f32 1e-05, %v481_v8 }
 0x2f6   :  { %2005 = vrsqrt.f32 %v482_v9 }
 0x300   :  { %v2006_v18 = vpop.eup %2005 }
 0x301   :  { %v491_v19 = vrot.slane %v2006_v18, %v2304_v16 }
 0x303   :  { %v492_v20 = vcombine.high %v491_v19, %v491_v19 }
 0x305   :  { %v499_v23 = vrot.slane %v492_v20, %v2304_v16 }
 0x307   :  { %v501_v24 = vmul.f32 %v499_v23, %v438_v21 }
 0x309   :  { %v502_v26 = vmul.f32 %v501_v24, %v476_v5  ;;  %v508_v27 = vrot.slane %v501_v24, %v2311_v22 }
 0x30b   :  { %v503_v30 = vsub.f32 %v439_v25, %v502_v26  ;;  %v512_v31 = vmul.f32 %v508_v27, %v2213_v11  ;;  %v513_v32 = vmul.f32 %v508_v27, %v2218_v17  ;;  %v510_v34 = vmul.f32 %v508_v27, %v2203_v58 }
 0x30c   :  { %v511_v35 = vmul.f32 %v508_v27, %v2205_v61  ;;  %v531_v11 = vadd.s32 16, %v2301_v15 }
 0x30d   :  { %v518_v33 = vrot.slane %v503_v30, %v2311_v22 }
 0x30e   :  { %v551_v57 = vand.u32 15, %v531_v11 }
 0x30f   :  { %v522_v39 = vadd.f32 %v518_v33, %v512_v31  ;;  %v523_v40 = vadd.f32 %v518_v33, %v513_v32  ;;  %v520_v41 = vadd.f32 %v518_v33, %v510_v34  ;;  %v521_v42 = vadd.f32 %v518_v33, %v511_v35 }
 0x310   :  { %vm592_vm10 = vcmp.ge.s32.totalorder %v551_v57, 1 }
 0x311   :  { %v527_v43 = vmax.f32 %v523_v40, 0.0  ;;  %v524_v17 = vmax.f32 %v520_v41, 0.0  ;;  %v525_v44 = vmax.f32 %v521_v42, 0.0  ;;  %v526_v45 = vmax.f32 %v522_v39, 0.0  ;;  %vm1731_vm11 = vmpackc.low %vm2026_vm6, %vm592_vm10 }
 0x313   :  { %v581_v47 = vrot.slane %v524_v17, 7  ;;  %v582_v48 = vrot.slane %v525_v44, 7  ;;  %v584_v49 = vrot.slane %v527_v43, 7  ;;  %v608_v50 = vpack.c.bf16 %v525_v44, %v524_v17 }
 0x314   :  { %v610_v51 = vrot.slane %v524_v17, 1  ;;  %v611_v52 = vrot.slane %v525_v44, 1  ;;  %v612_v53 = vrot.slane %v526_v45, 1  ;;  %v613_v54 = vrot.slane %v527_v43, 1 }
 0x315   :  { %v588_v55 = vsel %vm585_vm1, %v581_v47, %v582_v48  ;;  %v589_v56 = vsel %vm585_vm1, %v584_v49, %v581_v47  ;;  %861 = vmatprep.mubr.bf16.mxu0 %v608_v50  ;;  %v609_v2 = vpack.c.bf16 %v527_v43, %v526_v45  ;;  %v583_v3 = vrot.slane %v526_v45, 7 }
 0x316   :  { %v1729_v59 = vpack.c.bf16 %v588_v55, %v589_v56  ;;  %v615_v60 = vsel %vm614_vm3, %v612_v53, %v613_v54  ;;  %v616_v62 = vsel %vm614_vm3, %v611_v52, %v612_v53  ;;  %v617_v63 = vsel %vm614_vm3, %v610_v51, %v611_v52 }
 0x317   :  { %v618_v0 = vsel %vm614_vm3, %v613_v54, %v610_v51  ;;  %v1735_v1 = vpack.c.bf16 %v616_v62, %v617_v63  ;;  %v586_v5 = vsel %vm585_vm1, %v583_v3, %v584_v49  ;;  %v587_v6 = vsel %vm585_vm1, %v582_v48, %v583_v3  ;;  %v1957_v62 = vld [vmem:[%s2732_s3] ss:$16 sps:$4 sm:$0xff]   ;;  %v1960_v63 = vld [vmem:[%s2732_s3 + $0x8] ss:$16 sps:$4 sm:$0xff]  }
 0x318   :  { %1730 = vmatmul.mubr.msk.bf16.vlgmr.msra.gmra.mrb[8].mxu0 %vm1728_vm7, %v1729_v59  ;;  %v1738_v4 = vpack.c.bf16 %v618_v0, %v615_v60  ;;  %v1732_v7 = vpack.c.bf16 %v586_v5, %v587_v6  ;;  %v1959_v60 = vld [vmem:[%s2732_s3 + $0x4] ss:$16 sps:$4 sm:$0xff]   ;;  %v1962_v0 = vld [vmem:[%s2732_s3 + $0xc] ss:$16 sps:$4 sm:$0xff]   ;;  %v1963_v3 = vld [vmem:[%s2732_s3 + $0x20] ss:$16 sps:$4 sm:$0xff]  }
 0x319   :  { %1882 = vmatprep.mubr.msk.bf16.mxu1 %vm1734_vm8, %v1735_v1  ;;  %869 = vmatprep.mubr.bf16.mxu0 %v609_v2  ;;  %v1965_v1 = vld [vmem:[%s2732_s3 + $0x24] ss:$16 sps:$4 sm:$0xff]   ;;  %v1968_v2 = vld [vmem:[%s2732_s3 + $0x2c] ss:$16 sps:$4 sm:$0xff]  }
 0x31a   :  { %1883 = vmatmul.mubr.msk.bf16.vlgmr.msra.gmra.mrb[8].mxu1 %vm1737_vm9, %v1738_v4  ;;  %1210 = vmatprep.subr.bf16.mxu0 %v1959_v60  ;;  %v1966_v4 = vld [vmem:[%s2732_s3 + $0x28] ss:$16 sps:$4 sm:$0xff]   ;;  %v1971_v5 = vld [vmem:[%s2732_s3 + $0x44] ss:$16 sps:$4 sm:$0xff]   ;;  %v1974_v6 = vld [vmem:[%s2732_s3 + $0x4c] ss:$16 sps:$4 sm:$0xff]  }
 0x31b   :  { %1211 = vmatpush1.bf16.msra.mxu0 %v1957_v62  ;;  %1263 = vmatprep.subr.bf16.mxu1 %v1962_v0 }
 0x31c   :  { %1264 = vmatpush1.bf16.msra.mxu1 %v1960_v63  ;;  %1212 = vmatprep.subr.bf16.mxu0 %v1965_v1 }
 0x31d   :  { %1265 = vmatprep.subr.bf16.mxu1 %v1968_v2 }
 0x31f   :  { %1213 = vmatpush1.bf16.msra.mxu0 %v1963_v3 }
 0x320   :  { %1733 = vmatmul.mubr.msk.bf16.gmra.mrb[12].mxu0 %vm1731_vm11, %v1732_v7  ;;  %1266 = vmatpush1.bf16.msra.mxu1 %v1966_v4  ;;  %v1969_v7 = vld [vmem:[%s2732_s3 + $0x40] ss:$16 sps:$4 sm:$0xff]  }
 0x321   :  { %1214 = vmatprep.subr.bf16.mxu0 %v1971_v5  ;;  %1267 = vmatprep.subr.bf16.mxu1 %v1974_v6 }
 0x323   :  { %1215 = vmatpush1.bf16.msra.mxu0 %v1969_v7 }
 0x3eb   :  { %v1844_v8 = vpop.f32.mrb[8].mxu0 }
 0x3ec   :  { %v1845_v9 = vpop.f32.mrb[9].mxu0 }
 0x3ed   :  { %v1846_v10 = vadd.f32 %v1845_v9, %v1844_v8  ;;  %v1884_v12 = vpop.f32.mrb[8].mxu1  ;;  %v1847_v14 = vpop.f32.mrb[10].mxu0  ;;  %v1972_v8 = vld [vmem:[%s2732_s3 + $0x48] ss:$16 sps:$4 sm:$0xff]   ;;  %v1977_v9 = vld [vmem:[%s2732_s3 + $0x64] ss:$16 sps:$4 sm:$0xff]  }
 0x3ee   :  { %v912_v18 = vpop.f32.mrb[9].mxu1  ;;  %v1848_v19 = vpop.f32.mrb[11].mxu0  ;;  %1268 = vmatpush1.bf16.msra.mxu1 %v1972_v8  ;;  %1216 = vmatprep.subr.bf16.mxu0 %v1977_v9 }
 0x3ef   :  { %v2367_v20 = vadd.f32 %v1846_v10, %v912_v18  ;;  %v1849_v21 = vadd.f32 %v1848_v19, %v1847_v14  ;;  %v1885_v23 = vpop.f32.mrb[10].mxu1  ;;  %v1980_v10 = vld [vmem:[%s2732_s3 + $0x6c] ss:$16 sps:$4 sm:$0xff]   ;;  %v1978_v14 = vld [vmem:[%s2732_s3 + $0x68] ss:$16 sps:$4 sm:$0xff]  }
 0x3f0   :  { %v915_v24 = vpop.f32.mrb[11].mxu1  ;;  %1269 = vmatprep.subr.bf16.mxu1 %v1980_v10  ;;  %v1983_v18 = vld [vmem:[%s2732_s3 + $0x84] ss:$16 sps:$4 sm:$0xff]   ;;  %v1986_v19 = vld [vmem:[%s2732_s3 + $0x8c] ss:$16 sps:$4 sm:$0xff]  }
 0x3f1   :  { %v2369_v25 = vadd.f32 %v1849_v21, %v915_v24  ;;  %v938_v32 = vmul.f32 %v2367_v20, %v2367_v20  ;;  %v1981_v21 = vld [vmem:[%s2732_s3 + $0x80] ss:$16 sps:$4 sm:$0xff]   ;;  %v1989_v24 = vld [vmem:[%s2732_s3 + $0xa4] ss:$16 sps:$4 sm:$0xff]  }
 0x3f2   :  { %1270 = vmatpush1.bf16.msra.mxu1 %v1978_v14 }
 0x3f3   :  { %v1850_v26 = vpop.f32.mrb[12].mxu0  ;;  %v939_v28 = vmul.f32 %v2369_v25, %v2369_v25  ;;  %v929_v33 = vadd.f32 %v2369_v25, %v2367_v20  ;;  %1271 = vmatprep.subr.bf16.mxu1 %v1986_v19 }
 0x3f4   :  { %v1851_v27 = vpop.f32.mrb[13].mxu0 }
 0x3f5   :  { %v1852_v29 = vadd.f32 %v1851_v27, %v1850_v26  ;;  %v1853_v30 = vpop.f32.mrb[14].mxu0  ;;  %v942_v36 = vadd.f32 %v939_v28, %v938_v32  ;;  %v1992_v26 = vld [vmem:[%s2732_s3 + $0xac] ss:$16 sps:$4 sm:$0xff]   ;;  %v1987_v27 = vld [vmem:[%s2732_s3 + $0xa0] ss:$16 sps:$4 sm:$0xff]  }
 0x3f6   :  { %v1854_v31 = vpop.f32.mrb[15].mxu0  ;;  %v1990_v28 = vld [vmem:[%s2732_s3 + $0xa8] ss:$16 sps:$4 sm:$0xff]   ;;  %v1998_v32 = vld [vmem:[%s2732_s3 + $0xcc] ss:$16 sps:$4 sm:$0xff]  }
 0x3f7   :  { %v2377_v34 = vadd.f32 %v1884_v12, %v1852_v29  ;;  %v1855_v35 = vadd.f32 %v1854_v31, %v1853_v30  ;;  %v1975_v12 = vld [vmem:[%s2732_s3 + $0x60] ss:$16 sps:$4 sm:$0xff]   ;;  %v1995_v30 = vld [vmem:[%s2732_s3 + $0xc4] ss:$16 sps:$4 sm:$0xff]   ;;  %v1996_v31 = vld [vmem:[%s2732_s3 + $0xc8] ss:$16 sps:$4 sm:$0xff]  }
 0x3f8   :  { %1217 = vmatpush1.bf16.msra.mxu0 %v1975_v12  ;;  %v1993_v29 = vld [vmem:[%s2732_s3 + $0xc0] ss:$16 sps:$4 sm:$0xff]  }
 0x3f9   :  { %v930_v37 = vadd.f32 %v929_v33, %v2377_v34  ;;  %v940_v38 = vmul.f32 %v2377_v34, %v2377_v34  ;;  %v2382_v39 = vadd.f32 %v1885_v23, %v1855_v35  ;;  %v1984_v23 = vld [vmem:[%s2732_s3 + $0x88] ss:$16 sps:$4 sm:$0xff]   ;;  %1218 = vmatprep.subr.bf16.mxu0 %v1983_v18  ;;  %v2001_v33 = vld [vmem:[%s2732_s3 + $0xe4] ss:$16 sps:$4 sm:$0xff]   ;;  %v2004_v35 = vld [vmem:[%s2732_s3 + $0xec] ss:$16 sps:$4 sm:$0xff]  }
 0x3fa   :  { %1272 = vmatpush1.bf16.msra.mxu1 %v1984_v23 }
 0x3fb   :  { %v943_v40 = vadd.f32 %v942_v36, %v940_v38  ;;  %v931_v41 = vadd.f32 %v930_v37, %v2382_v39  ;;  %v941_v42 = vmul.f32 %v2382_v39, %v2382_v39  ;;  %1273 = vmatprep.subr.bf16.mxu1 %v1992_v26  ;;  %v1999_v36 = vld [vmem:[%s2732_s3 + $0xe0] ss:$16 sps:$4 sm:$0xff]   ;;  %v2027_v37 = vmov 0   ;;  %v2002_v38 = vld [vmem:[%s2732_s3 + $0xe8] ss:$16 sps:$4 sm:$0xff]  }
 0x3fc   :  { %1219 = vmatpush1.bf16.msra.mxu0 %v1981_v21  ;;  %1242 = vmatprep.mubr.bf16.mxu0 %v2027_v37 }
 0x3fd   :  { %v932_v11 = vrot.slane %v931_v41, 4  ;;  %v944_v43 = vadd.f32 %v943_v40, %v941_v42  ;;  %1220 = vmatprep.subr.bf16.mxu0 %v1989_v24  ;;  %1295 = vmatprep.mubr.bf16.mxu1 %v2027_v37 }
 0x3fe   :  { %1274 = vmatpush1.bf16.msra.mxu1 %v1990_v28 }
 0x3ff   :  { %v933_v17 = vadd.f32 %v932_v11, %v931_v41  ;;  %v945_v44 = vrot.slane %v944_v43, 4  ;;  %1275 = vmatprep.subr.bf16.mxu1 %v1998_v32 }
 0x400   :  { %1221 = vmatpush1.bf16.msra.mxu0 %v1987_v27 }
 0x401   :  { %v934_v45 = vrot.slane %v933_v17, 2  ;;  %v946_v58 = vadd.f32 %v945_v44, %v944_v43  ;;  %1222 = vmatprep.subr.bf16.mxu0 %v1995_v30 }
 0x402   :  { %1276 = vmatpush1.bf16.msra.mxu1 %v1996_v31 }
 0x403   :  { %v935_v61 = vadd.f32 %v934_v45, %v933_v17  ;;  %v947_v46 = vrot.slane %v946_v58, 2  ;;  %1277 = vmatprep.subr.bf16.mxu1 %v2004_v35 }
 0x404   :  { %1223 = vmatpush1.bf16.msra.mxu0 %v1993_v29 }
 0x405   :  { %v936_v47 = vrot.slane %v935_v61, 1  ;;  %v948_v48 = vadd.f32 %v947_v46, %v946_v58  ;;  %1224 = vmatprep.subr.bf16.mxu0 %v2001_v33  ;;  %v927_v46 = vld [vmem:[%s2733_s6] sm:$0x1] }
 0x406   :  { %1278 = vmatpush1.bf16.msra.mxu1 %v2002_v38 }
 0x407   :  { %v949_v49 = vrot.slane %v948_v48, 1  ;;  %v937_v50 = vadd.f32 %v936_v47, %v935_v61 }
 0x408   :  { %1225 = vmatpush1.bf16.msra.mxu0 %v1999_v36 }
 0x409   :  { %v950_v51 = vadd.f32 %v949_v49, %v948_v48  ;;  %v928_v49 = vld [vmem:[%s2734_s7] sm:$0x1] }
 0x40b   :  { %v951_v52 = vsel %vm462_vm0, %v937_v50, %v950_v51 }
 0x40c   :  { %952 = vrot.lane.b32.xlu0 %v951_v52, %s2021_s12 }
 0x47e   :  { %v953_v53 = vpop.permute.xlu0 %952 }
 0x47f   :  { %v954_v54 = vadd.f32 %v953_v53, %v951_v52 }
 0x481   :  { %955 = vrot.lane.b32.xlu1 %v954_v54, %s2022_s13 }
 0x4f3   :  { %v956_v55 = vpop.permute.xlu1 %955 }
 0x4f4   :  { %v957_v56 = vadd.f32 %v956_v55, %v954_v54 }
 0x4f6   :  { %958 = vrot.lane.b32.xlu0 %v957_v56, %s2023_s14 }
 0x568   :  { %v959_v57 = vpop.permute.xlu0 %958 }
 0x569   :  { %v2391_v59 = vadd.f32 %v959_v57, %v957_v56 }
 0x56b   :  { %961 = vrot.lane.b32.xlu1 %v2391_v59, %s2024_s17 }
 0x5dd   :  { %v962_v40 = vpop.permute.xlu1 %961 }
 0x5de   :  { %v963_v41 = vadd.f32 %v962_v40, %v2391_v59 }
 0x5e0   :  { %v964_v42 = vmul.f32 0.001953125, %v963_v41 }
 0x5e2   :  { %v965_v11 = vmul.f32 %v964_v42, %v964_v42 }
 0x5e4   :  { %v967_v43 = vrot.slane %v965_v11, 7 }
 0x5e6   :  { %v969_v17 = vsub.f32 %v964_v42, %v967_v43 }
 0x5e8   :  { %v970_v44 = vadd.f32 1e-05, %v969_v17 }
 0x5ea   :  { %2007 = vrsqrt.f32 %v970_v44 }
 0x5f4   :  { %v2008_v45 = vpop.eup %2007 }
 0x5f5   :  { %v979_v58 = vrot.slane %v2008_v45, %v2304_v16 }
 0x5f7   :  { %v980_v61 = vcombine.high %v979_v58, %v979_v58 }
 0x5f9   :  { %v987_v47 = vrot.slane %v980_v61, %v2304_v16 }
 0x5fb   :  { %v989_v48 = vmul.f32 %v987_v47, %v927_v46 }
 0x5fd   :  { %v990_v50 = vmul.f32 %v989_v48, %v964_v42  ;;  %v996_v51 = vrot.slane %v989_v48, %v2311_v22 }
 0x5ff   :  { %v991_v52 = vsub.f32 %v928_v49, %v990_v50  ;;  %v998_v54 = vmul.f32 %v996_v51, %v2367_v20  ;;  %v999_v55 = vmul.f32 %v996_v51, %v2369_v25  ;;  %v1000_v62 = vmul.f32 %v996_v51, %v2377_v34 }
 0x600   :  { %v1001_v63 = vmul.f32 %v996_v51, %v2382_v39 }
 0x601   :  { %v1006_v53 = vrot.slane %v991_v52, %v2311_v22 }
 0x603   :  { %v1008_v56 = vadd.f32 %v1006_v53, %v998_v54  ;;  %v1009_v57 = vadd.f32 %v1006_v53, %v999_v55  ;;  %v1010_v1 = vadd.f32 %v1006_v53, %v1000_v62  ;;  %v1011_v2 = vadd.f32 %v1006_v53, %v1001_v63 }
 0x605   :  { %v1012_v59 = vmax.f32 %v1008_v56, 0.0  ;;  %v1013_v60 = vmax.f32 %v1009_v57, 0.0  ;;  %v1014_v3 = vmax.f32 %v1010_v1, 0.0  ;;  %v1015_v4 = vmax.f32 %v1011_v2, 0.0 }
 0x607   :  { %v1016_v0 = vpack.c.bf16 %v1013_v60, %v1012_v59  ;;  %v1017_v20 = vpack.c.bf16 %v1015_v4, %v1014_v3 }
 0x609   :  { %1243 = vmatmul.mubr.bf16.vlgmr.msra.gmra.mrb[16].mxu0 %v1016_v0  ;;  %1296 = vmatmul.mubr.bf16.vlgmr.msra.gmra.mrb[12].mxu1 %v1016_v0 }
 0x60a   :  { %1252 = vmatprep.mubr.bf16.mxu0 %v2027_v37  ;;  %1305 = vmatprep.mubr.bf16.mxu1 %v2027_v37 }
 0x611   :  { %1253 = vmatmul.mubr.bf16.gmra.mrb[20].mxu0 %v1017_v20  ;;  %1306 = vmatmul.mubr.bf16.gmra.mrb[16].mxu1 %v1017_v20 }
 0x6dc   :  { %v2506_v25 = vpop.f32.mrb[16].mxu0  ;;  %v2508_v5 = vpop.f32.mrb[12].mxu1 }
 0x6dd   :  { %v2510_v6 = vpop.f32.mrb[17].mxu0  ;;  %v2512_v34 = vpop.f32.mrb[13].mxu1  ;;  %v1354_v39 = vmul.f32 %v2506_v25, %v2506_v25  ;;  %v1356_v7 = vmul.f32 %v2508_v5, %v2508_v5 }
 0x6de   :  { %v1355_v8 = vmul.f32 %v2510_v6, %v2510_v6  ;;  %v1357_v9 = vmul.f32 %v2512_v34, %v2512_v34  ;;  %v2522_v10 = vpop.f32.mrb[18].mxu0  ;;  %v2524_v12 = vpop.f32.mrb[14].mxu1 }
 0x6df   :  { %v1318_v14 = vadd.f32 %v2522_v10, %v2506_v25  ;;  %v1358_v18 = vmul.f32 %v2522_v10, %v2522_v10  ;;  %v1336_v19 = vadd.f32 %v2524_v12, %v2508_v5  ;;  %v1360_v21 = vmul.f32 %v2524_v12, %v2524_v12  ;;  %v2534_v23 = vpop.f32.mrb[19].mxu0  ;;  %v2536_v24 = vpop.f32.mrb[15].mxu1 }
 0x6e0   :  { %v1327_v26 = vadd.f32 %v2534_v23, %v2510_v6  ;;  %v1359_v27 = vmul.f32 %v2534_v23, %v2534_v23  ;;  %v1345_v28 = vadd.f32 %v2536_v24, %v2512_v34  ;;  %v1361_v29 = vmul.f32 %v2536_v24, %v2536_v24 }
 0x6e1   :  { %v1370_v30 = vadd.f32 %v1358_v18, %v1354_v39  ;;  %v1388_v31 = vadd.f32 %v1360_v21, %v1356_v7 }
 0x6e2   :  { %v1379_v32 = vadd.f32 %v1359_v27, %v1355_v8  ;;  %v1397_v33 = vadd.f32 %v1361_v29, %v1357_v9 }
 0x6e4   :  { %v2546_v35 = vpop.f32.mrb[20].mxu0  ;;  %v2548_v36 = vpop.f32.mrb[16].mxu1 }
 0x6e5   :  { %v1319_v37 = vadd.f32 %v1318_v14, %v2546_v35  ;;  %v1362_v38 = vmul.f32 %v2546_v35, %v2546_v35  ;;  %v1337_v40 = vadd.f32 %v1336_v19, %v2548_v36  ;;  %v1364_v41 = vmul.f32 %v2548_v36, %v2548_v36  ;;  %v2556_v42 = vpop.f32.mrb[21].mxu0  ;;  %v2558_v11 = vpop.f32.mrb[17].mxu1 }
 0x6e6   :  { %v1328_v43 = vadd.f32 %v1327_v26, %v2556_v42  ;;  %v1363_v17 = vmul.f32 %v2556_v42, %v2556_v42  ;;  %v1346_v44 = vadd.f32 %v1345_v28, %v2558_v11  ;;  %v1365_v45 = vmul.f32 %v2558_v11, %v2558_v11  ;;  %v2566_v58 = vpop.f32.mrb[22].mxu0  ;;  %v2568_v61 = vpop.f32.mrb[18].mxu1 }
 0x6e7   :  { %v1371_v46 = vadd.f32 %v1370_v30, %v1362_v38  ;;  %v1389_v47 = vadd.f32 %v1388_v31, %v1364_v41  ;;  %v1320_v48 = vadd.f32 %v1319_v37, %v2566_v58  ;;  %v1366_v49 = vmul.f32 %v2566_v58, %v2566_v58  ;;  %v2573_v50 = vpop.f32.mrb[23].mxu0  ;;  %v2575_v51 = vpop.f32.mrb[19].mxu1 }
 0x6e8   :  { %v1380_v52 = vadd.f32 %v1379_v32, %v1363_v17  ;;  %v1398_v53 = vadd.f32 %v1397_v33, %v1365_v45  ;;  %v1338_v54 = vadd.f32 %v1337_v40, %v2568_v61  ;;  %v1368_v55 = vmul.f32 %v2568_v61, %v2568_v61 }
 0x6e9   :  { %v1321_v56 = vrot.slane %v1320_v48, 4  ;;  %v1372_v57 = vadd.f32 %v1371_v46, %v1366_v49  ;;  %v1329_v59 = vadd.f32 %v1328_v43, %v2573_v50  ;;  %v1367_v60 = vmul.f32 %v2573_v50, %v2573_v50 }
 0x6ea   :  { %v1339_v62 = vrot.slane %v1338_v54, 4  ;;  %v1390_v63 = vadd.f32 %v1389_v47, %v1368_v55  ;;  %v1347_v0 = vadd.f32 %v1346_v44, %v2575_v51  ;;  %v1369_v1 = vmul.f32 %v2575_v51, %v2575_v51 }
 0x6eb   :  { %v1322_v2 = vadd.f32 %v1321_v56, %v1320_v48  ;;  %v1373_v3 = vrot.slane %v1372_v57, 4  ;;  %v1330_v4 = vrot.slane %v1329_v59, 4  ;;  %v1381_v20 = vadd.f32 %v1380_v52, %v1367_v60 }
 0x6ec   :  { %v1340_v39 = vadd.f32 %v1339_v62, %v1338_v54  ;;  %v1391_v7 = vrot.slane %v1390_v63, 4  ;;  %v1348_v8 = vrot.slane %v1347_v0, 4  ;;  %v1399_v9 = vadd.f32 %v1398_v53, %v1369_v1 }
 0x6ed   :  { %v1323_v14 = vrot.slane %v1322_v2, 2  ;;  %v1374_v18 = vadd.f32 %v1373_v3, %v1372_v57  ;;  %v1331_v19 = vadd.f32 %v1330_v4, %v1329_v59  ;;  %v1382_v21 = vrot.slane %v1381_v20, 4 }
 0x6ee   :  { %v1341_v26 = vrot.slane %v1340_v39, 2  ;;  %v1392_v27 = vadd.f32 %v1391_v7, %v1390_v63  ;;  %v1349_v28 = vadd.f32 %v1348_v8, %v1347_v0  ;;  %v1400_v29 = vrot.slane %v1399_v9, 4 }
 0x6ef   :  { %v1324_v30 = vadd.f32 %v1323_v14, %v1322_v2  ;;  %v1375_v31 = vrot.slane %v1374_v18, 2  ;;  %v1332_v32 = vrot.slane %v1331_v19, 2  ;;  %v1383_v33 = vadd.f32 %v1382_v21, %v1381_v20 }
 0x6f0   :  { %v1342_v37 = vadd.f32 %v1341_v26, %v1340_v39  ;;  %v1393_v38 = vrot.slane %v1392_v27, 2  ;;  %v1350_v40 = vrot.slane %v1349_v28, 2  ;;  %v1401_v41 = vadd.f32 %v1400_v29, %v1399_v9 }
 0x6f1   :  { %v1333_v43 = vadd.f32 %v1332_v32, %v1331_v19  ;;  %v1384_v17 = vrot.slane %v1383_v33, 2  ;;  %v1325_v44 = vrot.slane %v1324_v30, 1  ;;  %v1376_v45 = vadd.f32 %v1375_v31, %v1374_v18 }
 0x6f2   :  { %v1351_v46 = vadd.f32 %v1350_v40, %v1349_v28  ;;  %v1402_v47 = vrot.slane %v1401_v41, 2  ;;  %v1343_v48 = vrot.slane %v1342_v37, 1  ;;  %v1394_v49 = vadd.f32 %v1393_v38, %v1392_v27 }
 0x6f3   :  { %v1334_v52 = vrot.slane %v1333_v43, 1  ;;  %v1385_v53 = vadd.f32 %v1384_v17, %v1383_v33  ;;  %v1377_v54 = vrot.slane %v1376_v45, 1  ;;  %v1326_v59 = vadd.f32 %v1325_v44, %v1324_v30 }
 0x6f4   :  { %v1352_v55 = vrot.slane %v1351_v46, 1  ;;  %v1403_v56 = vadd.f32 %v1402_v47, %v1401_v41  ;;  %v1395_v57 = vrot.slane %v1394_v49, 1  ;;  %v1344_v63 = vadd.f32 %v1343_v48, %v1342_v37 }
 0x6f5   :  { %v1378_v60 = vadd.f32 %v1377_v54, %v1376_v45  ;;  %v1386_v62 = vrot.slane %v1385_v53, 1  ;;  %v1335_v3 = vadd.f32 %v1334_v52, %v1333_v43  ;;  %v1419_v14 = vand.u32 127, %v488_v13 }
 0x6f6   :  { %v1396_v0 = vadd.f32 %v1395_v57, %v1394_v49  ;;  %v1404_v1 = vrot.slane %v1403_v56, 1  ;;  %v1353_v39 = vadd.f32 %v1352_v55, %v1351_v46 }
 0x6f7   :  { %v1406_v2 = vsel %vm462_vm0, %v1326_v59, %v1378_v60  ;;  %v1387_v4 = vadd.f32 %v1386_v62, %v1385_v53  ;;  %vm1420_vm12 = vcmp.lt.s32.totalorder %v1419_v14, 32  ;;  %vm1437_vm13 = vcmp.lt.s32.totalorder %v1419_v14, 64 }
 0x6f8   :  { %1410 = vrot.lane.b32.xlu0 %v1406_v2, %s2023_s14  ;;  %v1408_v20 = vsel %vm462_vm0, %v1344_v63, %v1396_v0  ;;  %v1405_v7 = vadd.f32 %v1404_v1, %v1403_v56 }
 0x6f9   :  { %v1407_v8 = vsel %vm462_vm0, %v1335_v3, %v1387_v4 }
 0x6fa   :  { %1412 = vrot.lane.b32.xlu1 %v1407_v8, %s2023_s14  ;;  %v1409_v9 = vsel %vm462_vm0, %v1353_v39, %v1405_v7 }
 0x6fc   :  { %1414 = vrot.lane.b32.xlu0 %v1408_v20, %s2023_s14 }
 0x6fe   :  { %1416 = vrot.lane.b32.xlu1 %v1409_v9, %s2023_s14 }
 0x76a   :  { %v1411_v18 = vpop.permute.xlu0 %1410 }
 0x76c   :  { %v1413_v19 = vpop.permute.xlu1 %1412 }
 0x76d   :  { %v1423_v21 = vsel %vm1420_vm12, %v1411_v18, %v1413_v19 }
 0x76e   :  { %v1426_v26 = vadd.f32 %v1423_v21, %v1407_v8  ;;  %v1415_v27 = vpop.permute.xlu0 %1414  ;;  %v1499_v21 = vsub.s32 2, %v2301_v15 }
 0x76f   :  { %v1422_v33 = vsel %vm1420_vm12, %v1413_v19, %v1415_v27  ;;  %v1495_v19 = vsub.s32 1, %v2301_v15 }
 0x770   :  { %1431 = vrot.lane.b32.xlu1 %v1426_v26, %s2024_s17  ;;  %v1417_v28 = vpop.permute.xlu1 %1416  ;;  %v1427_v37 = vadd.f32 %v1422_v33, %v1408_v20 }
 0x771   :  { %v1421_v29 = vsel %vm1420_vm12, %v1415_v27, %v1417_v28  ;;  %v1424_v30 = vsel %vm1420_vm12, %v1417_v28, %v1411_v18  ;;  %v1316_v18 = vld [vmem:[%s2735_s8] sm:$0xf] }
 0x772   :  { %v1425_v31 = vadd.f32 %v1424_v30, %v1406_v2  ;;  %v1428_v32 = vadd.f32 %v1421_v29, %v1409_v9 }
 0x774   :  { %1429 = vrot.lane.b32.xlu0 %v1425_v31, %s2024_s17  ;;  %1435 = vrot.lane.b32.xlu1 %v1428_v32, %s2024_s17 }
 0x778   :  { %1433 = vrot.lane.b32.xlu0 %v1427_v37, %s2024_s17 }
 0x7e2   :  { %v1432_v13 = vpop.permute.xlu1 %1431 }
 0x7e6   :  { %v1430_v38 = vpop.permute.xlu0 %1429  ;;  %v1436_v40 = vpop.permute.xlu1 %1435 }
 0x7e7   :  { %v1440_v41 = vsel %vm1437_vm13, %v1430_v38, %v1432_v13  ;;  %v1441_v43 = vsel %vm1437_vm13, %v1436_v40, %v1430_v38 }
 0x7e8   :  { %v1443_v17 = vadd.f32 %v1440_v41, %v1426_v26  ;;  %v1442_v44 = vadd.f32 %v1441_v43, %v1425_v31  ;;  %v1503_v26 = vsub.s32 3, %v2301_v15  ;;  %v2611_v43 = vld [vmem:[%s2728_s0] sm:$0xff] }
 0x7e9   :  { %v1596_v15 = vunpack.c.l.bf16 %v2611_v43 }
 0x7ea   :  { %v1434_v45 = vpop.permute.xlu0 %1433  ;;  %v1447_v52 = vadd.f32 %v1443_v17, %v1442_v44 }
 0x7eb   :  { %v1438_v46 = vsel %vm1437_vm13, %v1434_v45, %v1436_v40  ;;  %v1439_v47 = vsel %vm1437_vm13, %v1432_v13, %v1434_v45 }
 0x7ec   :  { %v1444_v48 = vadd.f32 %v1439_v47, %v1427_v37  ;;  %v1445_v49 = vadd.f32 %v1438_v46, %v1428_v32 }
 0x7ee   :  { %v1446_v53 = vadd.f32 %v1445_v49, %v1442_v44  ;;  %v1448_v54 = vadd.f32 %v1444_v48, %v1443_v17  ;;  %v1449_v55 = vadd.f32 %v1445_v49, %v1444_v48  ;;  %v1597_v17 = vunpack.c.h.bf16 %v2611_v43  ;;  %v2618_v44 = vld [vmem:[%s2728_s0 + $0x10] sm:$0xff]  ;;  %v2015_v49 = vld [vmem:[%s2728_s0 + $0x8] sm:$0xff] }
 0x7ef   :  { %v1600_v45 = vunpack.c.l.bf16 %v2618_v44  ;;  %v1601_v48 = vunpack.c.h.bf16 %v2618_v44 }
 0x7f0   :  { %v1450_v56 = vadd.f32 %v1448_v54, %v1446_v53  ;;  %v1451_v57 = vadd.f32 %v1449_v55, %v1447_v52  ;;  %v1598_v52 = vunpack.c.l.bf16 %v2015_v49  ;;  %v1599_v53 = vunpack.c.h.bf16 %v2015_v49  ;;  %v2630_v54 = vld [vmem:[%s2728_s0 + $0x18] sm:$0xff] }
 0x7f1   :  { %v1602_v55 = vunpack.c.l.bf16 %v2630_v54 }
 0x7f2   :  { %v1452_v59 = vmul.f32 0.001953125, %v1450_v56  ;;  %v1453_v60 = vmul.f32 0.001953125, %v1451_v57  ;;  %v1603_v56 = vunpack.c.h.bf16 %v2630_v54  ;;  %v2017_v57 = vld [vmem:[%s2728_s0 + $0x20] sm:$0xff] }
 0x7f4   :  { %v1454_v62 = vmul.f32 %v1452_v59, %v1452_v59  ;;  %v1455_v63 = vmul.f32 %v1453_v60, %v1453_v60 }
 0x7f6   :  { %v1458_v0 = vrot.slane %v1454_v62, 7  ;;  %v1459_v1 = vrot.slane %v1455_v63, 7  ;;  %v2640_v63 = vld [vmem:[%s2728_s0 + $0x30] sm:$0xff] }
 0x7f8   :  { %v1462_v2 = vsub.f32 %v1452_v59, %v1458_v0  ;;  %v1463_v3 = vsub.f32 %v1453_v60, %v1459_v1  ;;  %v1608_v0 = vunpack.c.l.bf16 %v2640_v63  ;;  %v1609_v1 = vunpack.c.h.bf16 %v2640_v63 }
 0x7fa   :  { %v1464_v4 = vadd.f32 1e-05, %v1462_v2  ;;  %v1465_v20 = vadd.f32 1e-05, %v1463_v3  ;;  %v2019_v2 = vld [vmem:[%s2728_s0 + $0x28] sm:$0xff] }
 0x7fb   :  { %v1606_v3 = vunpack.c.l.bf16 %v2019_v2 }
 0x7fc   :  { %2009 = vrsqrt.f32 %v1464_v4  ;;  %v1607_v4 = vunpack.c.h.bf16 %v2019_v2 }
 0x7fd   :  { %2011 = vrsqrt.f32 %v1465_v20  ;;  %v1317_v20 = vld [vmem:[%s2736_s9] sm:$0xf] }
 0x806   :  { %v2010_v39 = vpop.eup %2009 }
 0x807   :  { %v2012_v7 = vpop.eup %2011 }
 0x808   :  { %v1470_v8 = vcombine.low %v2010_v39, %v2012_v7  ;;  %v2020_v39 = vld [vmem:[%s2728_s0 + $0x38] sm:$0xff] }
 0x809   :  { %v1610_v7 = vunpack.c.l.bf16 %v2020_v39 }
 0x80a   :  { %v1477_v9 = vrot.slane %v1470_v8, %v2304_v16  ;;  %v1611_v8 = vunpack.c.h.bf16 %v2020_v39 }
 0x80c   :  { %v1478_v14 = vcombine.high %v1477_v9, %v1477_v9 }
 0x80e   :  { %v1485_v27 = vrot.slane %v1478_v14, %v2304_v16 }
 0x810   :  { %v1487_v28 = vmul.f32 %v1485_v27, %v1316_v18 }
 0x812   :  { %v1492_v29 = vrot.slane %v1487_v28, %v2311_v22  ;;  %v1496_v30 = vrot.slane %v1487_v28, %v1495_v19  ;;  %v1500_v31 = vrot.slane %v1487_v28, %v1499_v21  ;;  %v1504_v32 = vrot.slane %v1487_v28, %v1503_v26 }
 0x814   :  { %v1509_v33 = vmul.f32 %v1492_v29, %v1452_v59  ;;  %v1510_v37 = vmul.f32 %v1496_v30, %v1453_v60  ;;  %v1511_v13 = vmul.f32 %v1500_v31, %v1452_v59  ;;  %v1512_v38 = vmul.f32 %v1504_v32, %v1453_v60 }
 0x815   :  { %v1604_v59 = vunpack.c.l.bf16 %v2017_v57  ;;  %v1605_v60 = vunpack.c.h.bf16 %v2017_v57  ;;  %v1543_v14 = vmul.f32 %v1492_v29, %v2506_v25  ;;  %v1544_v18 = vmul.f32 %v1496_v30, %v2510_v6 }
 0x816   :  { %v1517_v40 = vcombine.low %v1509_v33, %v1510_v37  ;;  %v1518_v41 = vcombine.low %v1511_v13, %v1512_v38  ;;  %v1545_v27 = vmul.f32 %v1500_v31, %v2508_v5  ;;  %v1546_v28 = vmul.f32 %v1504_v32, %v2512_v34 }
 0x817   :  { %v1547_v33 = vmul.f32 %v1492_v29, %v2522_v10  ;;  %v1548_v13 = vmul.f32 %v1496_v30, %v2534_v23  ;;  %v1549_v38 = vmul.f32 %v1500_v31, %v2524_v12  ;;  %v1553_v25 = vmul.f32 %v1500_v31, %v2548_v36 }
 0x818   :  { %v1525_v46 = vrot.slane %v1517_v40, %v2304_v16  ;;  %v1532_v47 = vrot.slane %v1518_v41, %v2304_v16  ;;  %v1550_v40 = vmul.f32 %v1504_v32, %v2536_v24  ;;  %v1551_v41 = vmul.f32 %v1492_v29, %v2546_v35 }
 0x819   :  { %v1554_v6 = vmul.f32 %v1504_v32, %v2558_v11  ;;  %v1556_v23 = vmul.f32 %v1496_v30, %v2573_v50  ;;  %v1557_v12 = vmul.f32 %v1500_v31, %v2568_v61  ;;  %v1558_v24 = vmul.f32 %v1504_v32, %v2575_v51 }
 0x81a   :  { %v1533_v62 = vcombine.low %v1525_v46, %v1532_v47  ;;  %v1555_v47 = vmul.f32 %v1492_v29, %v2566_v58 }
 0x81c   :  { %v1540_v9 = vrot.slane %v1533_v62, %v2304_v16  ;;  %v1552_v16 = vmul.f32 %v1496_v30, %v2556_v42 }
 0x81e   :  { %v1542_v37 = vsub.f32 %v1317_v20, %v1540_v9 }
 0x820   :  { %v1563_v5 = vrot.slane %v1542_v37, %v2311_v22  ;;  %v1567_v34 = vrot.slane %v1542_v37, %v1495_v19  ;;  %v1571_v46 = vrot.slane %v1542_v37, %v1499_v21  ;;  %v1575_v10 = vrot.slane %v1542_v37, %v1503_v26 }
 0x822   :  { %v1580_v35 = vadd.f32 %v1563_v5, %v1543_v14  ;;  %v1581_v49 = vadd.f32 %v1567_v34, %v1544_v18  ;;  %v1582_v42 = vadd.f32 %v1571_v46, %v1545_v27  ;;  %v1583_v54 = vadd.f32 %v1575_v10, %v1546_v28 }
 0x823   :  { %v1584_v36 = vadd.f32 %v1563_v5, %v1547_v33  ;;  %v1585_v57 = vadd.f32 %v1567_v34, %v1548_v13  ;;  %v1586_v11 = vadd.f32 %v1571_v46, %v1549_v38  ;;  %v1587_v62 = vadd.f32 %v1575_v10, %v1550_v40 }
 0x824   :  { %v1588_v22 = vadd.f32 %v1563_v5, %v1551_v41  ;;  %v1589_v19 = vadd.f32 %v1567_v34, %v1552_v16  ;;  %v1590_v21 = vadd.f32 %v1571_v46, %v1553_v25  ;;  %v1591_v26 = vadd.f32 %v1575_v10, %v1554_v6 }
 0x825   :  { %v1592_v63 = vadd.f32 %v1563_v5, %v1555_v47  ;;  %v1593_v58 = vadd.f32 %v1567_v34, %v1556_v23  ;;  %v1594_v29 = vadd.f32 %v1571_v46, %v1557_v12  ;;  %v1595_v50 = vadd.f32 %v1575_v10, %v1558_v24 }
 0x826   :  { %v1612_v61 = vadd.f32 %v1596_v15, %v1580_v35  ;;  %v1613_v51 = vadd.f32 %v1597_v17, %v1581_v49  ;;  %v1614_v30 = vadd.f32 %v1598_v52, %v1582_v42  ;;  %v1615_v31 = vadd.f32 %v1599_v53, %v1583_v54 }
 0x827   :  { %v1616_v32 = vadd.f32 %v1600_v45, %v1584_v36  ;;  %v1617_v2 = vadd.f32 %v1601_v48, %v1585_v57  ;;  %v1618_v20 = vadd.f32 %v1602_v55, %v1586_v11  ;;  %v1619_v39 = vadd.f32 %v1603_v56, %v1587_v62 }
 0x828   :  { %v1620_v9 = vadd.f32 %v1604_v59, %v1588_v22  ;;  %v1621_v14 = vadd.f32 %v1605_v60, %v1589_v19  ;;  %v1622_v18 = vadd.f32 %v1606_v3, %v1590_v21  ;;  %v1623_v27 = vadd.f32 %v1607_v4, %v1591_v26 }
 0x829   :  { %v1624_v28 = vadd.f32 %v1608_v0, %v1592_v63  ;;  %v1625_v33 = vadd.f32 %v1609_v1, %v1593_v58  ;;  %v1626_v15 = vadd.f32 %v1610_v7, %v1594_v29  ;;  %v1627_v37 = vadd.f32 %v1611_v8, %v1595_v50 }
 0x82a   :  { %v1628_v43 = vmax.f32 %v1612_v61, 0.0  ;;  %v1629_v17 = vmax.f32 %v1613_v51, 0.0  ;;  %v1630_v52 = vmax.f32 %v1614_v30, 0.0  ;;  %v1631_v53 = vmax.f32 %v1615_v31, 0.0 }
 0x82b   :  { %v1632_v13 = vmax.f32 %v1616_v32, 0.0  ;;  %v1633_v38 = vmax.f32 %v1617_v2, 0.0  ;;  %v1634_v45 = vmax.f32 %v1618_v20, 0.0  ;;  %v1635_v40 = vmax.f32 %v1619_v39, 0.0 }
 0x82c   :  { %v1636_v44 = vmax.f32 %v1620_v9, 0.0  ;;  %v1637_v48 = vmax.f32 %v1621_v14, 0.0  ;;  %v1638_v55 = vmax.f32 %v1622_v18, 0.0  ;;  %v1639_v56 = vmax.f32 %v1623_v27, 0.0  ;;  %1644 = vst [vmem:[%s2737_s10] sm:$0xff] %v1628_v43  ;;  %1645 = vst [vmem:[%s2737_s10 + $0x8] sm:$0xff] %v1629_v17 }
 0x82d   :  { %1646 = vst [vmem:[%s2737_s10 + $0x10] sm:$0xff] %v1630_v52  ;;  %1647 = vst [vmem:[%s2737_s10 + $0x18] sm:$0xff] %v1631_v53  ;;  %v1640_v59 = vmax.f32 %v1624_v28, 0.0  ;;  %v1641_v60 = vmax.f32 %v1625_v33, 0.0  ;;  %v1642_v0 = vmax.f32 %v1626_v15, 0.0  ;;  %v1643_v1 = vmax.f32 %v1627_v37, 0.0 }
 0x82e   :  { %1648 = vst [vmem:[%s2737_s10 + $0x20] sm:$0xff] %v1632_v13  ;;  %1649 = vst [vmem:[%s2737_s10 + $0x28] sm:$0xff] %v1633_v38 }
 0x82f   :  { %1650 = vst [vmem:[%s2737_s10 + $0x30] sm:$0xff] %v1634_v45  ;;  %1651 = vst [vmem:[%s2737_s10 + $0x38] sm:$0xff] %v1635_v40 }
 0x830   :  { %1652 = vst [vmem:[%s2737_s10 + $0x40] sm:$0xff] %v1636_v44  ;;  %1653 = vst [vmem:[%s2737_s10 + $0x48] sm:$0xff] %v1637_v48 }
 0x831   :  { %1654 = vst [vmem:[%s2737_s10 + $0x50] sm:$0xff] %v1638_v55  ;;  %1655 = vst [vmem:[%s2737_s10 + $0x58] sm:$0xff] %v1639_v56 }
 0x832   :  { %1656 = vst [vmem:[%s2737_s10 + $0x60] sm:$0xff] %v1640_v59  ;;  %1657 = vst [vmem:[%s2737_s10 + $0x68] sm:$0xff] %v1641_v60 }
 0x833   :  { %1658 = vst [vmem:[%s2737_s10 + $0x70] sm:$0xff] %v1642_v0  ;;  %1659 = vst [vmem:[%s2737_s10 + $0x78] sm:$0xff] %v1643_v1 }

</bundles_post_ra>
